<compile_context>
chip_gen: v7x
topology: tpu7x:2x2x1
jax: 0.10.0
libtpu: 0.0.40
codegen_flags: <defaults>
</compile_context>

<pallas_src>
import functools

import jax
import jax.numpy as jnp
from jax import lax
from jax.experimental import pallas as pl
from jax.experimental.pallas import tpu as pltpu

LANE = 128


def _round_up(x, m):
    return (x + m - 1) // m * m


# ----------------------------- padding helpers (glue) -----------------------------
def get_pad_value(input_size, filter_size, stride, dilation=1):
    effective = (filter_size - 1) * dilation + 1
    out_size = (input_size + stride - 1) // stride
    needed = max(0, (out_size - 1) * stride + effective - input_size)
    left = needed // 2
    right = (needed - 1) // 2 + 1
    return left, right


def pad_same_ndhwc(x, kernel_shape, stride=(1, 1, 1)):
    # x: (N, T, H, W, C) -- TF-style asymmetric SAME padding, like pad_same() in the module.
    pads = [(0, 0)]
    for dim, k, s in zip(x.shape[1:4], kernel_shape, stride):
        pads.append(get_pad_value(dim, k, s))
    pads.append((0, 0))
    return jnp.pad(x, pads)


# ----------------------------- Pallas kernels -----------------------------
def _conv3d_kernel(x_ref, w_ref, o_ref, stats_ref, acc_ref, *,
                   kt, kh, kw, ho, wo, sh, sw, cin_p, co_tile):
    """One grid step = one (batch, Cout-tile, output-frame, time-tap).

    x_ref:     (Hp, Wp, Cin_p)        padded input frame t*stride_t + dt
    w_ref:     (kt*kh*kw, Cin_p, Ct)  full weight slab (resident across t, dt)
    o_ref:     (Ho, Wo, Ct)           conv output tile (written at last dt)
    stats_ref: (2, Ct)                per-tile [sum, sum(x^2)] for BatchNorm
    acc_ref:   (Ho*Wo, Ct) f32        VMEM accumulator across the dt reduction axis
    """
    dt = pl.program_id(3)

    @pl.when(dt == 0)
    def _():
        acc_ref[...] = jnp.zeros_like(acc_ref)

    local = jnp.zeros((ho * wo, co_tile), jnp.float32)
    for dh in range(kh):
        for dw in range(kw):
            if sh == 1 and sw == 1:
                patch = x_ref[dh:dh + ho, dw:dw + wo, :]
            else:
                patch = x_ref[pl.ds(dh, ho, sh), pl.ds(dw, wo, sw), :]
            tap = dt * (kh * kw) + dh * kw + dw
            local = local + jnp.dot(
                patch.reshape(ho * wo, cin_p),
                w_ref[tap],
                preferred_element_type=jnp.float32,
            )
    acc_ref[...] += local

    @pl.when(dt == kt - 1)
    def _():
        y = acc_ref[...]
        o_ref[...] = y.reshape(ho, wo, co_tile)
        # Partial BatchNorm statistics for this (n, t, co) tile.
        stats_ref[0:1, :] = jnp.sum(y, axis=0, keepdims=True)
        stats_ref[1:2, :] = jnp.sum(y * y, axis=0, keepdims=True)


def _bn_relu_kernel(y_ref, stats_ref, g_ref, b_ref, o_ref, *,
                    inv_count, eps, use_bn, use_relu):
    """Normalize (training-mode BatchNorm3d, biased variance) + optional ReLU."""
    y = y_ref[...]
    if use_bn:
        mean = stats_ref[0:1, :] * inv_count            # (1, Ct)
        ex2 = stats_ref[1:2, :] * inv_count
        var = jnp.maximum(ex2 - mean * mean, 0.0)
        scale = g_ref[...] * lax.rsqrt(var + eps)       # (1, Ct)
        shift = b_ref[...] - mean * scale
        y = y * scale + shift
    if use_relu:
        y = jnp.maximum(y, 0.0)
    o_ref[...] = y.astype(o_ref.dtype)


# ----------------------------- pallas_call wrappers -----------------------------
def conv3d_pallas(x_pad_p, w_flat_p, kernel_shape, stride, co_tile):
    """x_pad_p: (N, Tp, Hp, Wp, Cin_p) f32, channel-padded SAME-padded input.
    w_flat_p: (kt*kh*kw, Cin_p, Cout_p) f32.  Returns (conv_out_padded, partial_stats)."""
    n, tp, hp, wp, cin_p = x_pad_p.shape
    kt, kh, kw = kernel_shape
    st, sh, sw = stride
    cout_p = w_flat_p.shape[-1]
    to = (tp - kt) // st + 1
    ho = (hp - kh) // sh + 1
    wo = (wp - kw) // sw + 1
    n_co = cout_p // co_tile

    kernel = functools.partial(
        _conv3d_kernel, kt=kt, kh=kh, kw=kw, ho=ho, wo=wo,
        sh=sh, sw=sw, cin_p=cin_p, co_tile=co_tile)

    y, stats = pl.pallas_call(
        kernel,
        out_shape=(
            jax.ShapeDtypeStruct((n, to, ho, wo, cout_p), jnp.float32),
            jax.ShapeDtypeStruct((n, to, 2, cout_p), jnp.float32),
        ),
        grid=(n, n_co, to, kt),
        in_specs=[
            # One padded input frame per (t, dt): time block size 1 => block idx == frame idx.
            pl.BlockSpec((None, None, hp, wp, cin_p),
                         lambda b, co, t, dt: (b, t * st + dt, 0, 0, 0)),
            # Weight slab: index depends only on co => stays VMEM-resident across t, dt.
            pl.BlockSpec((kt * kh * kw, cin_p, co_tile),
                         lambda b, co, t, dt: (0, 0, co)),
        ],
        out_specs=(
            pl.BlockSpec((None, None, ho, wo, co_tile),
                         lambda b, co, t, dt: (b, t, 0, 0, co)),
            pl.BlockSpec((None, None, 2, co_tile),
                         lambda b, co, t, dt: (b, t, 0, co)),
        ),
        scratch_shapes=[pltpu.VMEM((ho * wo, co_tile), jnp.float32)],
        compiler_params=pltpu.CompilerParams(
            dimension_semantics=("parallel", "parallel", "parallel", "arbitrary"),
            vmem_limit_bytes=48 * 1024 * 1024,
        ),
    )(x_pad_p, w_flat_p)
    return y, stats


def bn_relu_pallas(y_p, stats_sum, gamma_p, beta_p, count, eps, use_bn, use_relu, co_tile):
    n, to, ho, wo, cout_p = y_p.shape
    n_co = cout_p // co_tile
    kernel = functools.partial(
        _bn_relu_kernel, inv_count=1.0 / float(count), eps=eps,
        use_bn=use_bn, use_relu=use_relu)
    return pl.pallas_call(
        kernel,
        out_shape=jax.ShapeDtypeStruct(y_p.shape, jnp.float32),
        grid=(n, n_co, to),
        in_specs=[
            pl.BlockSpec((None, None, ho, wo, co_tile),
                         lambda b, co, t: (b, t, 0, 0, co)),
            pl.BlockSpec((2, co_tile), lambda b, co, t: (0, co)),
            pl.BlockSpec((1, co_tile), lambda b, co, t: (0, co)),
            pl.BlockSpec((1, co_tile), lambda b, co, t: (0, co)),
        ],
        out_specs=pl.BlockSpec((None, None, ho, wo, co_tile),
                               lambda b, co, t: (b, t, 0, 0, co)),
        compiler_params=pltpu.CompilerParams(
            dimension_semantics=("parallel", "parallel", "parallel"),
            vmem_limit_bytes=48 * 1024 * 1024,
        ),
    )(y_p, stats_sum, gamma_p, beta_p)


# ----------------------------- Unit3d forward -----------------------------
def unit3d_forward(x_ncdhw, w_oidhw, gamma, beta, *,
                   kernel_shape=(1, 1, 1), stride=(1, 1, 1),
                   use_batch_norm=True, use_relu=True, padding_valid=True, eps=1e-5):
    """x_ncdhw: (N, Cin, T, H, W); w_oidhw: (Cout, Cin, kt, kh, kw).  Returns NCDHW."""
    # TODO(synk): Conv3d bias term (use_bias=True) not implemented; module default is False.
    kt, kh, kw = kernel_shape
    cout, cin = w_oidhw.shape[0], w_oidhw.shape[1]
    cin_p = _round_up(cin, LANE)
    cout_p = _round_up(cout, LANE)
    co_tile = 2 * LANE if cout_p % (2 * LANE) == 0 else LANE

    # ---- layout + padding glue ----
    x = jnp.transpose(x_ncdhw, (0, 2, 3, 4, 1)).astype(jnp.float32)   # NCDHW -> NDHWC
    if padding_valid:
        x = pad_same_ndhwc(x, kernel_shape, stride)                   # TF-SAME (pad_same)
    else:
        pads = [(0, 0)] + [((k - 1) // 2, (k - 1) // 2) for k in kernel_shape] + [(0, 0)]
        x = jnp.pad(x, pads)                                          # Conv3d symmetric pad
    x = jnp.pad(x, [(0, 0)] * 4 + [(0, cin_p - cin)])                 # lane-pad Cin

    w = jnp.transpose(w_oidhw, (2, 3, 4, 1, 0)).astype(jnp.float32)   # -> (kt,kh,kw,Cin,Cout)
    w = jnp.pad(w, [(0, 0)] * 3 + [(0, cin_p - cin), (0, cout_p - cout)])
    w = w.reshape(kt * kh * kw, cin_p, cout_p)

    # ---- conv (+ fused BN partial stats) ----
    y_p, stats_partial = conv3d_pallas(x, w, kernel_shape, stride, co_tile)

    n_b, to, ho, wo, _ = y_p.shape
    if use_batch_norm or use_relu:
        gamma_p = jnp.pad(gamma.astype(jnp.float32), (0, cout_p - cout)).reshape(1, cout_p)
        beta_p = jnp.pad(beta.astype(jnp.float32), (0, cout_p - cout)).reshape(1, cout_p)
        stats_sum = jnp.sum(stats_partial, axis=(0, 1))               # tiny (2, Cout_p) reduce
        count = n_b * to * ho * wo
        out_p = bn_relu_pallas(y_p, stats_sum, gamma_p, beta_p, count, eps,
                               use_batch_norm, use_relu, co_tile)
    else:
        out_p = y_p

    out = out_p[..., :cout]                                           # drop Cout padding
    return jnp.transpose(out, (0, 4, 1, 2, 3))                        # NDHWC -> NCDHW


# ----------------------------- main -----------------------------
if __name__ == "__main__":
    key = jax.random.PRNGKey(0)
    k1, k2, k3, k4 = jax.random.split(key, 4)

    # Small shapes consistent with Unit3d usage (PyTorch NCDHW layout).
    N, Cin, T, H, W = 2, 8, 4, 8, 8
    Cout = 16
    ks = (3, 3, 3)
    stride = (1, 1, 1)
    eps = 1e-5

    w_pt = jax.random.normal(k1, (Cout, Cin) + ks, jnp.float32) * 0.1   # (Cout,Cin,kt,kh,kw)
    gamma = 1.0 + 0.1 * jax.random.normal(k2, (Cout,), jnp.float32)
    beta = 0.1 * jax.random.normal(k3, (Cout,), jnp.float32)
    x_pt = jax.random.normal(k4, (N, Cin, T, H, W), jnp.float32)

    out = unit3d_forward(x_pt, w_pt, gamma, beta, kernel_shape=ks, stride=stride,
                         use_batch_norm=True, use_relu=True, padding_valid=True, eps=eps)
    out = jax.block_until_ready(out)

    # Pure-JAX reference (conv -> batch-stats BN -> ReLU), compared in NCDHW.
    x_ndhwc = jnp.transpose(x_pt, (0, 2, 3, 4, 1))
    xp = pad_same_ndhwc(x_ndhwc, ks, stride)
    w_dhwio = jnp.transpose(w_pt, (2, 3, 4, 1, 0))
    conv_ref = lax.conv_general_dilated(
        xp, w_dhwio, window_strides=stride, padding="VALID",
        dimension_numbers=("NDHWC", "DHWIO", "NDHWC"))
    mean = conv_ref.mean(axis=(0, 1, 2, 3))
    var = ((conv_ref - mean) ** 2).mean(axis=(0, 1, 2, 3))
    ref = jnp.maximum((conv_ref - mean) / jnp.sqrt(var + eps) * gamma + beta, 0.0)
    ref = jnp.transpose(ref, (0, 4, 1, 2, 3))

    assert out.shape == ref.shape, (out.shape, ref.shape)
    err = float(jnp.max(jnp.abs(out - ref)))
    assert err < 2e-3, f"max abs error {err}"
    print("KERNEL_OK")
</pallas_src>

<mosaic_0001>
module attributes {stable_mosaic.version = 11 : i64} {
  func.func @_conv3d_kernel(%arg0: i32, %arg1: i32, %arg2: i32, %arg3: i32, %arg4: memref<1x1x10x10x128xf32, #tpu.memory_space<vmem>>, %arg5: memref<27x128x128xf32, #tpu.memory_space<vmem>>, %arg6: memref<1x1x8x8x128xf32, #tpu.memory_space<vmem>>, %arg7: memref<1x1x2x128xf32, #tpu.memory_space<vmem>>, %arg8: memref<64x128xf32, #tpu.memory_space<vmem>>) attributes {dimension_semantics = [#tpu.dimension_semantics<parallel>, #tpu.dimension_semantics<parallel>, #tpu.dimension_semantics<parallel>, #tpu.dimension_semantics<arbitrary>], iteration_bounds = array<i64: 2, 1, 4, 3>, scalar_prefetch = 0 : i64, scratch_operands = 1 : i64, tpu.core_type = #tpu.core_type<tc>, window_params = [{transform_indices = @transform_0, window_bounds = array<i64: 1, 1, 10, 10, 128>}, {transform_indices = @transform_1, window_bounds = array<i64: 27, 128, 128>}, {transform_indices = @transform_2, window_bounds = array<i64: 1, 1, 8, 8, 128>}, {transform_indices = @transform_3, window_bounds = array<i64: 1, 1, 2, 128>}]} {
    %c0_i32 = arith.constant 0 : i32
    %0 = arith.cmpi eq, %arg3, %c0_i32 : i32
    %1 = arith.extui %0 : i1 to i32
    %c0_i32_0 = arith.constant 0 : i32
    %2 = arith.cmpi ne, %1, %c0_i32_0 : i32
    scf.if %2 {
      %cst_98 = arith.constant 0.000000e+00 : f32
      %109 = vector.broadcast %cst_98 : f32 to vector<64x128xf32>
      %c0_99 = arith.constant 0 : index
      %c0_100 = arith.constant 0 : index
      %110 = vector.load %arg8[%c0_99, %c0_100] : memref<64x128xf32, #tpu.memory_space<vmem>>, vector<64x128xf32>
      tpu.vector_store %arg8[%c0_99, %c0_100], %109 {strides = array<i32>} : memref<64x128xf32, #tpu.memory_space<vmem>>, vector<64x128xf32>,
    } else {
    }
    %cst = arith.constant 0.000000e+00 : f32
    %3 = vector.broadcast %cst : f32 to vector<64x128xf32>
    %c0 = arith.constant 0 : index
    %c0_1 = arith.constant 0 : index
    %c0_2 = arith.constant 0 : index
    %c0_3 = arith.constant 0 : index
    %c0_4 = arith.constant 0 : index
    %4 = vector.load %arg4[%c0, %c0_1, %c0_2, %c0_3, %c0_4] : memref<1x1x10x10x128xf32, #tpu.memory_space<vmem>>, vector<1x1x8x8x128xf32>
    %5 = vector.shape_cast %4 : vector<1x1x8x8x128xf32> to vector<8x8x128xf32>
    %c9_i32 = arith.constant 9 : i32
    %6 = arith.muli %arg3, %c9_i32 : i32
    %c0_i32_5 = arith.constant 0 : i32
    %7 = arith.addi %6, %c0_i32_5 : i32
    %c0_i32_6 = arith.constant 0 : i32
    %8 = arith.addi %7, %c0_i32_6 : i32
    %9 = vector.shape_cast %5 : vector<8x8x128xf32> to vector<64x128xf32>
    %10 = arith.index_cast %8 : i32 to index
    %c0_7 = arith.constant 0 : index
    %c0_8 = arith.constant 0 : index
    %11 = vector.load %arg5[%10, %c0_7, %c0_8] : memref<27x128x128xf32, #tpu.memory_space<vmem>>, vector<1x128x128xf32>
    %12 = vector.shape_cast %11 : vector<1x128x128xf32> to vector<128x128xf32>
    %cst_9 = arith.constant dense<0.000000e+00> : vector<64x128xf32>
    %13 = tpu.matmul %9, %12, %cst_9 {dimension_numbers = #tpu.dot_dimension_numbers<[1], [0], [0], [1], [0, 0, 1, 1], [], []>} : vector<64x128xf32>, vector<128x128xf32>, vector<64x128xf32> -> vector<64x128xf32>
    %14 = arith.addf %3, %13 : vector<64x128xf32>
    %c0_10 = arith.constant 0 : index
    %c0_11 = arith.constant 0 : index
    %c0_12 = arith.constant 0 : index
    %c1 = arith.constant 1 : index
    %c0_13 = arith.constant 0 : index
    %15 = vector.load %arg4[%c0_10, %c0_11, %c0_12, %c1, %c0_13] : memref<1x1x10x10x128xf32, #tpu.memory_space<vmem>>, vector<1x1x8x8x128xf32>
    %16 = vector.shape_cast %15 : vector<1x1x8x8x128xf32> to vector<8x8x128xf32>
    %c9_i32_14 = arith.constant 9 : i32
    %17 = arith.muli %arg3, %c9_i32_14 : i32
    %c0_i32_15 = arith.constant 0 : i32
    %18 = arith.addi %17, %c0_i32_15 : i32
    %c1_i32 = arith.constant 1 : i32
    %19 = arith.addi %18, %c1_i32 : i32
    %20 = vector.shape_cast %16 : vector<8x8x128xf32> to vector<64x128xf32>
    %21 = arith.index_cast %19 : i32 to index
    %c0_16 = arith.constant 0 : index
    %c0_17 = arith.constant 0 : index
    %22 = vector.load %arg5[%21, %c0_16, %c0_17] : memref<27x128x128xf32, #tpu.memory_space<vmem>>, vector<1x128x128xf32>
    %23 = vector.shape_cast %22 : vector<1x128x128xf32> to vector<128x128xf32>
    %cst_18 = arith.constant dense<0.000000e+00> : vector<64x128xf32>
    %24 = tpu.matmul %20, %23, %cst_18 {dimension_numbers = #tpu.dot_dimension_numbers<[1], [0], [0], [1], [0, 0, 1, 1], [], []>} : vector<64x128xf32>, vector<128x128xf32>, vector<64x128xf32> -> vector<64x128xf32>
    %25 = arith.addf %14, %24 : vector<64x128xf32>
    %c0_19 = arith.constant 0 : index
    %c0_20 = arith.constant 0 : index
    %c0_21 = arith.constant 0 : index
    %c2 = arith.constant 2 : index
    %c0_22 = arith.constant 0 : index
    %26 = vector.load %arg4[%c0_19, %c0_20, %c0_21, %c2, %c0_22] : memref<1x1x10x10x128xf32, #tpu.memory_space<vmem>>, vector<1x1x8x8x128xf32>
    %27 = vector.shape_cast %26 : vector<1x1x8x8x128xf32> to vector<8x8x128xf32>
    %c9_i32_23 = arith.constant 9 : i32
    %28 = arith.muli %arg3, %c9_i32_23 : i32
    %c0_i32_24 = arith.constant 0 : i32
    %29 = arith.addi %28, %c0_i32_24 : i32
    %c2_i32 = arith.constant 2 : i32
    %30 = arith.addi %29, %c2_i32 : i32
    %31 = vector.shape_cast %27 : vector<8x8x128xf32> to vector<64x128xf32>
    %32 = arith.index_cast %30 : i32 to index
    %c0_25 = arith.constant 0 : index
    %c0_26 = arith.constant 0 : index
    %33 = vector.load %arg5[%32, %c0_25, %c0_26] : memref<27x128x128xf32, #tpu.memory_space<vmem>>, vector<1x128x128xf32>
    %34 = vector.shape_cast %33 : vector<1x128x128xf32> to vector<128x128xf32>
    %cst_27 = arith.constant dense<0.000000e+00> : vector<64x128xf32>
    %35 = tpu.matmul %31, %34, %cst_27 {dimension_numbers = #tpu.dot_dimension_numbers<[1], [0], [0], [1], [0, 0, 1, 1], [], []>} : vector<64x128xf32>, vector<128x128xf32>, vector<64x128xf32> -> vector<64x128xf32>
    %36 = arith.addf %25, %35 : vector<64x128xf32>
    %c0_28 = arith.constant 0 : index
    %c0_29 = arith.constant 0 : index
    %c1_30 = arith.constant 1 : index
    %c0_31 = arith.constant 0 : index
    %c0_32 = arith.constant 0 : index
    %37 = vector.load %arg4[%c0_28, %c0_29, %c1_30, %c0_31, %c0_32] : memref<1x1x10x10x128xf32, #tpu.memory_space<vmem>>, vector<1x1x8x8x128xf32>
    %38 = vector.shape_cast %37 : vector<1x1x8x8x128xf32> to vector<8x8x128xf32>
    %c9_i32_33 = arith.constant 9 : i32
    %39 = arith.muli %arg3, %c9_i32_33 : i32
    %c3_i32 = arith.constant 3 : i32
    %40 = arith.addi %39, %c3_i32 : i32
    %c0_i32_34 = arith.constant 0 : i32
    %41 = arith.addi %40, %c0_i32_34 : i32
    %42 = vector.shape_cast %38 : vector<8x8x128xf32> to vector<64x128xf32>
    %43 = arith.index_cast %41 : i32 to index
    %c0_35 = arith.constant 0 : index
    %c0_36 = arith.constant 0 : index
    %44 = vector.load %arg5[%43, %c0_35, %c0_36] : memref<27x128x128xf32, #tpu.memory_space<vmem>>, vector<1x128x128xf32>
    %45 = vector.shape_cast %44 : vector<1x128x128xf32> to vector<128x128xf32>
    %cst_37 = arith.constant dense<0.000000e+00> : vector<64x128xf32>
    %46 = tpu.matmul %42, %45, %cst_37 {dimension_numbers = #tpu.dot_dimension_numbers<[1], [0], [0], [1], [0, 0, 1, 1], [], []>} : vector<64x128xf32>, vector<128x128xf32>, vector<64x128xf32> -> vector<64x128xf32>
    %47 = arith.addf %36, %46 : vector<64x128xf32>
    %c0_38 = arith.constant 0 : index
    %c0_39 = arith.constant 0 : index
    %c1_40 = arith.constant 1 : index
    %c1_41 = arith.constant 1 : index
    %c0_42 = arith.constant 0 : index
    %48 = vector.load %arg4[%c0_38, %c0_39, %c1_40, %c1_41, %c0_42] : memref<1x1x10x10x128xf32, #tpu.memory_space<vmem>>, vector<1x1x8x8x128xf32>
    %49 = vector.shape_cast %48 : vector<1x1x8x8x128xf32> to vector<8x8x128xf32>
    %c9_i32_43 = arith.constant 9 : i32
    %50 = arith.muli %arg3, %c9_i32_43 : i32
    %c3_i32_44 = arith.constant 3 : i32
    %51 = arith.addi %50, %c3_i32_44 : i32
    %c1_i32_45 = arith.constant 1 : i32
    %52 = arith.addi %51, %c1_i32_45 : i32
    %53 = vector.shape_cast %49 : vector<8x8x128xf32> to vector<64x128xf32>
    %54 = arith.index_cast %52 : i32 to index
    %c0_46 = arith.constant 0 : index
    %c0_47 = arith.constant 0 : index
    %55 = vector.load %arg5[%54, %c0_46, %c0_47] : memref<27x128x128xf32, #tpu.memory_space<vmem>>, vector<1x128x128xf32>
    %56 = vector.shape_cast %55 : vector<1x128x128xf32> to vector<128x128xf32>
    %cst_48 = arith.constant dense<0.000000e+00> : vector<64x128xf32>
    %57 = tpu.matmul %53, %56, %cst_48 {dimension_numbers = #tpu.dot_dimension_numbers<[1], [0], [0], [1], [0, 0, 1, 1], [], []>} : vector<64x128xf32>, vector<128x128xf32>, vector<64x128xf32> -> vector<64x128xf32>
    %58 = arith.addf %47, %57 : vector<64x128xf32>
    %c0_49 = arith.constant 0 : index
    %c0_50 = arith.constant 0 : index
    %c1_51 = arith.constant 1 : index
    %c2_52 = arith.constant 2 : index
    %c0_53 = arith.constant 0 : index
    %59 = vector.load %arg4[%c0_49, %c0_50, %c1_51, %c2_52, %c0_53] : memref<1x1x10x10x128xf32, #tpu.memory_space<vmem>>, vector<1x1x8x8x128xf32>
    %60 = vector.shape_cast %59 : vector<1x1x8x8x128xf32> to vector<8x8x128xf32>
    %c9_i32_54 = arith.constant 9 : i32
    %61 = arith.muli %arg3, %c9_i32_54 : i32
    %c3_i32_55 = arith.constant 3 : i32
    %62 = arith.addi %61, %c3_i32_55 : i32
    %c2_i32_56 = arith.constant 2 : i32
    %63 = arith.addi %62, %c2_i32_56 : i32
    %64 = vector.shape_cast %60 : vector<8x8x128xf32> to vector<64x128xf32>
    %65 = arith.index_cast %63 : i32 to index
    %c0_57 = arith.constant 0 : index
    %c0_58 = arith.constant 0 : index
    %66 = vector.load %arg5[%65, %c0_57, %c0_58] : memref<27x128x128xf32, #tpu.memory_space<vmem>>, vector<1x128x128xf32>
    %67 = vector.shape_cast %66 : vector<1x128x128xf32> to vector<128x128xf32>
    %cst_59 = arith.constant dense<0.000000e+00> : vector<64x128xf32>
    %68 = tpu.matmul %64, %67, %cst_59 {dimension_numbers = #tpu.dot_dimension_numbers<[1], [0], [0], [1], [0, 0, 1, 1], [], []>} : vector<64x128xf32>, vector<128x128xf32>, vector<64x128xf32> -> vector<64x128xf32>
    %69 = arith.addf %58, %68 : vector<64x128xf32>
    %c0_60 = arith.constant 0 : index
    %c0_61 = arith.constant 0 : index
    %c2_62 = arith.constant 2 : index
    %c0_63 = arith.constant 0 : index
    %c0_64 = arith.constant 0 : index
    %70 = vector.load %arg4[%c0_60, %c0_61, %c2_62, %c0_63, %c0_64] : memref<1x1x10x10x128xf32, #tpu.memory_space<vmem>>, vector<1x1x8x8x128xf32>
    %71 = vector.shape_cast %70 : vector<1x1x8x8x128xf32> to vector<8x8x128xf32>
    %c9_i32_65 = arith.constant 9 : i32
    %72 = arith.muli %arg3, %c9_i32_65 : i32
    %c6_i32 = arith.constant 6 : i32
    %73 = arith.addi %72, %c6_i32 : i32
    %c0_i32_66 = arith.constant 0 : i32
    %74 = arith.addi %73, %c0_i32_66 : i32
    %75 = vector.shape_cast %71 : vector<8x8x128xf32> to vector<64x128xf32>
    %76 = arith.index_cast %74 : i32 to index
    %c0_67 = arith.constant 0 : index
    %c0_68 = arith.constant 0 : index
    %77 = vector.load %arg5[%76, %c0_67, %c0_68] : memref<27x128x128xf32, #tpu.memory_space<vmem>>, vector<1x128x128xf32>
    %78 = vector.shape_cast %77 : vector<1x128x128xf32> to vector<128x128xf32>
    %cst_69 = arith.constant dense<0.000000e+00> : vector<64x128xf32>
    %79 = tpu.matmul %75, %78, %cst_69 {dimension_numbers = #tpu.dot_dimension_numbers<[1], [0], [0], [1], [0, 0, 1, 1], [], []>} : vector<64x128xf32>, vector<128x128xf32>, vector<64x128xf32> -> vector<64x128xf32>
    %80 = arith.addf %69, %79 : vector<64x128xf32>
    %c0_70 = arith.constant 0 : index
    %c0_71 = arith.constant 0 : index
    %c2_72 = arith.constant 2 : index
    %c1_73 = arith.constant 1 : index
    %c0_74 = arith.constant 0 : index
    %81 = vector.load %arg4[%c0_70, %c0_71, %c2_72, %c1_73, %c0_74] : memref<1x1x10x10x128xf32, #tpu.memory_space<vmem>>, vector<1x1x8x8x128xf32>
    %82 = vector.shape_cast %81 : vector<1x1x8x8x128xf32> to vector<8x8x128xf32>
    %c9_i32_75 = arith.constant 9 : i32
    %83 = arith.muli %arg3, %c9_i32_75 : i32
    %c6_i32_76 = arith.constant 6 : i32
    %84 = arith.addi %83, %c6_i32_76 : i32
    %c1_i32_77 = arith.constant 1 : i32
    %85 = arith.addi %84, %c1_i32_77 : i32
    %86 = vector.shape_cast %82 : vector<8x8x128xf32> to vector<64x128xf32>
    %87 = arith.index_cast %85 : i32 to index
    %c0_78 = arith.constant 0 : index
    %c0_79 = arith.constant 0 : index
    %88 = vector.load %arg5[%87, %c0_78, %c0_79] : memref<27x128x128xf32, #tpu.memory_space<vmem>>, vector<1x128x128xf32>
    %89 = vector.shape_cast %88 : vector<1x128x128xf32> to vector<128x128xf32>
    %cst_80 = arith.constant dense<0.000000e+00> : vector<64x128xf32>
    %90 = tpu.matmul %86, %89, %cst_80 {dimension_numbers = #tpu.dot_dimension_numbers<[1], [0], [0], [1], [0, 0, 1, 1], [], []>} : vector<64x128xf32>, vector<128x128xf32>, vector<64x128xf32> -> vector<64x128xf32>
    %91 = arith.addf %80, %90 : vector<64x128xf32>
    %c0_81 = arith.constant 0 : index
    %c0_82 = arith.constant 0 : index
    %c2_83 = arith.constant 2 : index
    %c2_84 = arith.constant 2 : index
    %c0_85 = arith.constant 0 : index
    %92 = vector.load %arg4[%c0_81, %c0_82, %c2_83, %c2_84, %c0_85] : memref<1x1x10x10x128xf32, #tpu.memory_space<vmem>>, vector<1x1x8x8x128xf32>
    %93 = vector.shape_cast %92 : vector<1x1x8x8x128xf32> to vector<8x8x128xf32>
    %c9_i32_86 = arith.constant 9 : i32
    %94 = arith.muli %arg3, %c9_i32_86 : i32
    %c6_i32_87 = arith.constant 6 : i32
    %95 = arith.addi %94, %c6_i32_87 : i32
    %c2_i32_88 = arith.constant 2 : i32
    %96 = arith.addi %95, %c2_i32_88 : i32
    %97 = vector.shape_cast %93 : vector<8x8x128xf32> to vector<64x128xf32>
    %98 = arith.index_cast %96 : i32 to index
    %c0_89 = arith.constant 0 : index
    %c0_90 = arith.constant 0 : index
    %99 = vector.load %arg5[%98, %c0_89, %c0_90] : memref<27x128x128xf32, #tpu.memory_space<vmem>>, vector<1x128x128xf32>
    %100 = vector.shape_cast %99 : vector<1x128x128xf32> to vector<128x128xf32>
    %cst_91 = arith.constant dense<0.000000e+00> : vector<64x128xf32>
    %101 = tpu.matmul %97, %100, %cst_91 {dimension_numbers = #tpu.dot_dimension_numbers<[1], [0], [0], [1], [0, 0, 1, 1], [], []>} : vector<64x128xf32>, vector<128x128xf32>, vector<64x128xf32> -> vector<64x128xf32>
    %102 = arith.addf %91, %101 : vector<64x128xf32>
    %c0_92 = arith.constant 0 : index
    %c0_93 = arith.constant 0 : index
    %103 = vector.load %arg8[%c0_92, %c0_93] : memref<64x128xf32, #tpu.memory_space<vmem>>, vector<64x128xf32>
    %104 = arith.addf %103, %102 : vector<64x128xf32>
    %c0_94 = arith.constant 0 : index
    %c0_95 = arith.constant 0 : index
    %105 = vector.load %arg8[%c0_94, %c0_95] : memref<64x128xf32, #tpu.memory_space<vmem>>, vector<64x128xf32>
    tpu.vector_store %arg8[%c0_94, %c0_95], %104 {strides = array<i32>} : memref<64x128xf32, #tpu.memory_space<vmem>>, vector<64x128xf32>,
    %c2_i32_96 = arith.constant 2 : i32
    %106 = arith.cmpi eq, %arg3, %c2_i32_96 : i32
    %107 = arith.extui %106 : i1 to i32
    %c0_i32_97 = arith.constant 0 : i32
    %108 = arith.cmpi ne, %107, %c0_i32_97 : i32
    scf.if %108 {
      %c0_98 = arith.constant 0 : index
      %c0_99 = arith.constant 0 : index
      %109 = vector.load %arg8[%c0_98, %c0_99] : memref<64x128xf32, #tpu.memory_space<vmem>>, vector<64x128xf32>
      %110 = vector.shape_cast %109 : vector<64x128xf32> to vector<8x8x128xf32>
      %c0_100 = arith.constant 0 : index
      %c0_101 = arith.constant 0 : index
      %c0_102 = arith.constant 0 : index
      %c0_103 = arith.constant 0 : index
      %c0_104 = arith.constant 0 : index
      %111 = vector.load %arg6[%c0_100, %c0_101, %c0_102, %c0_103, %c0_104] : memref<1x1x8x8x128xf32, #tpu.memory_space<vmem>>, vector<1x1x8x8x128xf32>
      %112 = vector.shape_cast %111 : vector<1x1x8x8x128xf32> to vector<8x8x128xf32>
      %113 = vector.shape_cast %110 : vector<8x8x128xf32> to vector<1x1x8x8x128xf32>
      tpu.vector_store %arg6[%c0_100, %c0_101, %c0_102, %c0_103, %c0_104], %113 {strides = array<i32>} : memref<1x1x8x8x128xf32, #tpu.memory_space<vmem>>, vector<1x1x8x8x128xf32>,
      %cst_105 = arith.constant dense<0.000000e+00> : vector<128xf32>
      %114 = vector.multi_reduction <add>, %109, %cst_105 [0] : vector<64x128xf32> to vector<128xf32>
      %115 = vector.shape_cast %114 : vector<128xf32> to vector<1x128xf32>
      %c0_106 = arith.constant 0 : index
      %c0_107 = arith.constant 0 : index
      %c0_108 = arith.constant 0 : index
      %c0_109 = arith.constant 0 : index
      %116 = vector.load %arg7[%c0_106, %c0_107, %c0_108, %c0_109] : memref<1x1x2x128xf32, #tpu.memory_space<vmem>>, vector<1x1x1x128xf32>
      %117 = vector.shape_cast %116 : vector<1x1x1x128xf32> to vector<1x128xf32>
      %118 = vector.shape_cast %115 : vector<1x128xf32> to vector<1x1x1x128xf32>
      tpu.vector_store %arg7[%c0_106, %c0_107, %c0_108, %c0_109], %118 {strides = array<i32>} : memref<1x1x2x128xf32, #tpu.memory_space<vmem>>, vector<1x1x1x128xf32>,
      %119 = arith.mulf %109, %109 : vector<64x128xf32>
      %cst_110 = arith.constant dense<0.000000e+00> : vector<128xf32>
      %120 = vector.multi_reduction <add>, %119, %cst_110 [0] : vector<64x128xf32> to vector<128xf32>
      %121 = vector.shape_cast %120 : vector<128xf32> to vector<1x128xf32>
      %c0_111 = arith.constant 0 : index
      %c0_112 = arith.constant 0 : index
      %c1_113 = arith.constant 1 : index
      %c0_114 = arith.constant 0 : index
      %122 = vector.load %arg7[%c0_111, %c0_112, %c1_113, %c0_114] : memref<1x1x2x128xf32, #tpu.memory_space<vmem>>, vector<1x1x1x128xf32>
      %123 = vector.shape_cast %122 : vector<1x1x1x128xf32> to vector<1x128xf32>
      %124 = vector.shape_cast %121 : vector<1x128xf32> to vector<1x1x1x128xf32>
      tpu.vector_store %arg7[%c0_111, %c0_112, %c1_113, %c0_114], %124 {strides = array<i32>} : memref<1x1x2x128xf32, #tpu.memory_space<vmem>>, vector<1x1x1x128xf32>,
    } else {
    }
    return
  }
  func.func @transform_0(%arg0: i32, %arg1: i32, %arg2: i32, %arg3: i32) -> (i32, i32, i32, i32, i32) {
    %c1_i32 = arith.constant 1 : i32
    %0 = arith.muli %arg2, %c1_i32 : i32
    %1 = arith.addi %0, %arg3 : i32
    %c0_i32 = arith.constant 0 : i32
    %c0_i32_0 = arith.constant 0 : i32
    %c0_i32_1 = arith.constant 0 : i32
    %c0_i32_2 = arith.constant 0 : i32
    return %arg0, %1, %c0_i32, %c0_i32_0, %c0_i32_1 : i32, i32, i32, i32, i32
  }
  func.func @transform_1(%arg0: i32, %arg1: i32, %arg2: i32, %arg3: i32) -> (i32, i32, i32) {
    %c0_i32 = arith.constant 0 : i32
    %c0_i32_0 = arith.constant 0 : i32
    %c0_i32_1 = arith.constant 0 : i32
    return %c0_i32, %c0_i32_0, %arg1 : i32, i32, i32
  }
  func.func @transform_2(%arg0: i32, %arg1: i32, %arg2: i32, %arg3: i32) -> (i32, i32, i32, i32, i32) {
    %c0_i32 = arith.constant 0 : i32
    %c0_i32_0 = arith.constant 0 : i32
    %c0_i32_1 = arith.constant 0 : i32
    return %arg0, %arg2, %c0_i32, %c0_i32_0, %arg1 : i32, i32, i32, i32, i32
  }
  func.func @transform_3(%arg0: i32, %arg1: i32, %arg2: i32, %arg3: i32) -> (i32, i32, i32, i32) {
    %c0_i32 = arith.constant 0 : i32
    %c0_i32_0 = arith.constant 0 : i32
    return %arg0, %arg2, %c0_i32, %arg1 : i32, i32, i32, i32
  }
}

</mosaic_0001>

<bundles_post_ra>
// kernel: tpu_custom_call.1
= control target key start
LH: loop header
LB: loop body
LE: loop exit
PB: predicated region body
PF: predicated region fallthrough
CT: control target
= control target key end

     0   :  { %s3848_s0 = inlined_call_operand.vmem [shape: f32[2,6,10,10,128], index: 0, kind: input, shape index: {}]   ;;  %s3849_s1 = inlined_call_operand.hbm [shape: f32[27,128,128], index: 1, kind: input, shape index: {}]   ;;  %s3850_s2 = inlined_call_operand.hbm [shape: f32[2,4,8,8,128], index: 2, kind: output, shape index: {0}]   ;;  %s3851_s3 = inlined_call_operand.hbm [shape: f32[2,4,2,128], index: 3, kind: output, shape index: {1}]  }
   0x1   :  { %3858 = sst [smem:[#allocation15_spill]] %s3848_s0 }
   0x2   :  { %9 = vsyncpa [#allocation4], 0 }
   0x3   :  { %10 = vsyncpa [#allocation5], 0 }
   0x4   :  { %12 = vsyncpa [#allocation5 + $0x1], 0 }
   0x5   :  { %13 = vsyncpa [#allocation8], 0 }
   0x6   :  { %15 = vsyncpa [#allocation8 + $0x1], 0  ;;  %s3311_s12 = smov 0   ;;  %s3313_s13 = smov 0  }
   0x7   :  { %s3315_s14 = smov 0   ;;  %s3317_s15 = smov 0  }
   0x8   :  { %s3319_s16 = smov 0   ;;  %s3321_s17 = smov 0  }
   0x9   :  { %s3323_s18 = smov 0   ;;  %s3325_s19 = smov 0  }
   0xa   :  { %s3327_s20 = smov 0   ;;  %s3329_s21 = smov 0  }
   0xb LB: > { %s1811_s22 = sadd.s32 4294967295, %s3281_s21   ;;  %s1812_s23 = sadd.s32 4294967294, %s3281_s21   ;;  %s3281_s21 = sphi %s3329_s21, %s21_s21   ;;  %s3277_s20 = sphi %s3327_s20, %s3883_s20   ;;  %s3273_s19 = sphi %s3325_s19, %s3882_s19   ;;  %s3269_s18 = sphi %s3323_s18, %s3881_s18   ;;  %s3265_s17 = sphi %s3321_s17, %s3880_s17   ;;  %s3261_s16 = sphi %s3319_s16, %s3879_s16   ;;  %s3257_s15 = sphi %s3317_s15, %s3878_s15   ;;  %s3253_s14 = sphi %s3315_s14, %s3877_s14   ;;  %s3249_s13 = sphi %s3313_s13, %s3876_s13   ;;  %s3245_s12 = sphi %s3311_s12, %s3875_s12  }
   0xc   : > { %s36_s24 = sadd.s32 1, %s3269_s18  ;;  %s39_s25 = sadd.s32 1, %s3273_s19 }
   0xd   : > { %p37_p0 = scmp.ge.s32.totalorder %s36_s24, 3  ;;  %s47_s26 = sadd.s32 1, %s3277_s20 }
   0xe   : > { %s114_s27 = sadd.s32 1, %s3253_s14  ;;  %p124_p1 = scmp.ne.s32.totalorder %s3253_s14, %s3249_s13 }
   0xf   : > { %s3885_s24 = smov (%p37_p0, %s36_s24), 0  ;;  %s3887_s25 = smov (!%p37_p0, %s39_s25), %s3273_s19 }
  0x10   : > { %3859 = sst [smem:[#allocation12_spill]] %s3885_s24  ;;  %p125_p2 = scmp.eq.s32.totalorder %s1811_s22, 23 }
  0x11   : > { %p130_p3 = scmp.ne.s32.totalorder %s3249_s13, %s3245_s12  ;;  %p41_p4 = scmp.ge.s32.totalorder %s3887_s25, 4 }
  0x12   : > { %p131_p5 = scmp.eq.s32.totalorder %s1812_s23, 23  ;;  %p3374_p6 = por %p125_p2, %p124_p1 }
  0x13   : > { %p1813_p7 = scmp.ge.s32.totalorder %s3281_s21, 1  ;;  %s3889_s25 = smov (%p41_p4, %s3887_s25), 0 }
  0x14   : > { %s3860_s28 = scalar_select %p3374_p6, 1, 0 }
  0x15   : > { %3861 = sst [smem:[#allocation13_spill]] %s3889_s25  ;;  %s3891_s26 = smov (!%p41_p4, %s47_s26), %s3277_s20 }
  0x16   : > { %s108_s29 = ssub.s32 %s3273_s19, %s3889_s25  ;;  %p3384_p8 = por %p131_p5, %p130_p3 }
  0x17   : > { %p49_p9 = scmp.ge.s32.totalorder %s3891_s26, 2  ;;  %p168_p10 = scmp.lt.s32.totalorder %s3281_s21, 25 }
  0x18   : > { %s3862_s30 = scalar_select %p3384_p8, 1, 0 }
  0x19   : > { %p3389_p11 = scmp.eq.s32.totalorder %s1811_s22, 0  ;;  %s3893_s26 = smov (%p49_p9, %s3891_s26), 0 }
  0x1a   : > { %3864 = sst [smem:[#allocation14_spill]] %s3893_s26  ;;  %p3395_p12 = pnand %p1813_p7, %p168_p10 }
  0x1b   : > { %s3863_s4 = scalar_select %p3389_p11, 1, 0 }
  0x1c   : > { %s3865_s5 = scalar_select %p3395_p12, 1, 0 }
  0x1d   : > { %s107_s6 = ssub.s32 %s3277_s20, %s3893_s26  ;;  %s3283_s7 = smov [#allocation3]  }
  0x1e   : > { %s182_s8 = sshll.u32 %s3283_s7, 4  ;;  %s109_s9 = sor.u32 %s108_s29, %s107_s6  ;;  %s183_s8 = int_to_ptr.vmem [resolvable:$true] %s182_s8 }
  0x1f   : > { %p3007_p13 = pneg %p3395_p12  ;;  %p112_p0 = scmp.eq.s32.totalorder %s109_s9, 0 }
  0x20   : > { %s3107_s25 = scalar_lea.hbm %s3849_s1, 55296 }
  0x21   : > { %p3405_p1 = pnand %p3389_p11, %p3007_p13  ;;  %p3108_p2 = scmp.ne.s32.totalorder %s3849_s1, %s3107_s25 }
  0x22   : > { %s3410_s11 = scalar_select %p112_p0, %s3253_s14, %s114_s27  }
  0x23   : > { %p3109_p3 = pneg %p3405_p1  ;;  %p3114_p7 = scmp.lt.u32.totalorder %s3107_s25, %s3849_s1 }
  0x25   : > { %p3110_p4 = pnand %p3109_p3, %p3108_p2 }
  0x27   : > { %p3111_p5 = pneg %p3110_p4 }
  0x29   : > { %p3116_p9 = pnand %p3114_p7, %p3111_p5 }
  0x2b   : > { %3119 = shalt.err (!%p3116_p9)
}
  0x2c   : > { %s3120_s27 = scalar_lea.vmem %s183_s8, 55296  ;;  %p3128_p8 = scmp.lt.s32.totalorder %s183_s8, %s183_s8 }
  0x2d   : > { %p3121_p10 = scmp.ne.s32.totalorder %s183_s8, %s3120_s27  ;;  %p3129_p6 = scmp.lt.s32.totalorder %s3120_s27, %s3120_s27 }
  0x2f   : > { %p3123_p13 = pnand %p3121_p10, %p3109_p3  ;;  %p3130_p11 = por %p3129_p6, %p3128_p8 }
  0x31   : > { %p3124_p0 = pneg %p3123_p13 }
  0x33   : > { %p3131_p12 = pnand %p3130_p11, %p3124_p0 }
  0x35   : > { %3134 = shalt.err (!%p3131_p12)
}
  0x36   : > { %s3284_s24 = smov 128   ;;  %s3285_s26 = smov 8  }
  0x37   : > { %3010 = dma.hbm_to_vmem [thread:$0]  (!%p3405_p1), %s3849_s1, 55296, %s183_s8, [#allocation4], %s3284_s24, %s3284_s24, %s3285_s26  }
  0x38   : > { %p3867_p2 = scmp.ne.s32.totalorder %s3865_s5, 0 }
  0x39   : > { %p3868_p4 = scmp.ne.s32.totalorder (!%p3867_p2), %s3863_s4, 0 }
  0x3a   : > { %212 = sbr.rel (%p3867_p2) target bundleno = 558 (0x22e), region = 28 }
  0x41   : > { %3232 = dma.done.wait (%p3868_p4), [#allocation4], 55296  }
  0x42   : > { %3234 = vsyncadd (%p3868_p4), [#allocation4], 4294912000  ;;  %s3435_s25 = sand.u32 1, %s3249_s13   ;;  %s246_s10 = sadd.s32 %s3257_s15, %s3261_s16 }
  0x43   : > { %s1818_s8 = sshll.u32 %s3435_s25, 6  ;;  %s1819_s22 = sshll.u32 %s3435_s25, 1 }
  0x44   : > { %p247_p6 = scmp.lt.s32.totalorder %s3265_s17, 1  ;;  %p249_p8 = scmp.lt.s32.totalorder %s246_s10, 5 }
  0x45   : > { %s3869_s0 = sld [smem:[#allocation15_spill]]  ;;  %s3448_s7 = scalar_lea.vmem [#allocation6], %s1818_s8 }
  0x46   : > { %s248_s5 = scalar_select %p247_p6, %s3265_s17, 1 }
  0x47   : > { %s3895_s10 = smov (!%p249_p8, %s246_s10), 5  ;;  %s3450_s9 = scalar_lea.vmem [#allocation7], %s1819_s22 }
  0x48   : > { %s2998_s23 = smul.u32 120, %s248_s5  ;;  %p1821_p11 = scmp.ne.s32.totalorder %s3257_s15, 0 }
  0x49   : > { %s2997_s29 = smul.u32 20, %s3895_s10  ;;  %v3286_v0 = vmov (!%p1821_p11), 0.0  }
  0x4a   : > { %260 = sbr.rel (%p1821_p11) target bundleno = 81 (0x51), region = 36  ;;  %261 = vst [vmem:[#allocation2] sm:$0xff] (!%p1821_p11), %v3286_v0  ;;  %262 = vst [vmem:[#allocation2 + $0x8] sm:$0xff] (!%p1821_p11), %v3286_v0 }
  0x4b   : > { %s253_s4 = sadd.s32 %s2998_s23, %s2997_s29  ;;  %263 = vst [vmem:[#allocation2 + $0x10] sm:$0xff] (!%p1821_p11), %v3286_v0  ;;  %264 = vst [vmem:[#allocation2 + $0x18] sm:$0xff] (!%p1821_p11), %v3286_v0 }
  0x4c   : > { %s1820_s6 = sshll.u32 %s253_s4, 3  ;;  %265 = vst [vmem:[#allocation2 + $0x20] sm:$0xff] (!%p1821_p11), %v3286_v0  ;;  %266 = vst [vmem:[#allocation2 + $0x28] sm:$0xff] (!%p1821_p11), %v3286_v0 }
  0x4d   : > { %s3446_s26 = scalar_lea.vmem %s3869_s0, %s1820_s6  ;;  %267 = vst [vmem:[#allocation2 + $0x30] sm:$0xff] (!%p1821_p11), %v3286_v0  ;;  %268 = vst [vmem:[#allocation2 + $0x38] sm:$0xff] (!%p1821_p11), %v3286_v0 }
  0x51 PF: > { %s1822_s10 = smul.u32 1152, %s3257_s15  ;;  %v296_v1 = vld [vmem:[%s3446_s26 + $0x1] sm:$0xff]  ;;  %v3456_v2 = vld [vmem:[%s3446_s26 + $0x11] sm:$0xff]  ;;  %p2007_p12 = scmp.ne.s32.totalorder %s3257_s15, 2 }
  0x52   : > { %2265 = vmatprep.mubr.f32.mxu1 %v296_v1  ;;  %2441 = vmatprep.mubr.f32.mxu0 %v3456_v2  ;;  %v3502_v61 = vld [vmem:[%s3446_s26 + $0x21] sm:$0xff] }
  0x53   : > { %s3459_s8 = scalar_lea.vmem [#allocation3], %s1822_s10 }
  0x54   : > { %v1824_v3 = vld [vmem:[%s3459_s8 + $0x80] sm:$0xff]  ;;  %v1825_v4 = vld [vmem:[%s3459_s8 + $0x88] sm:$0xff]  ;;  %v1826_v8 = vld [vmem:[%s3459_s8 + $0x90] sm:$0xff] }
  0x55   : > { %v1891_v5 = vld [vmem:[%s3459_s8 + $0x200] sm:$0xff]  ;;  %v2629_v6 = vpack.c.bf16 %v1825_v4, %v1824_v3  ;;  %v1892_v7 = vld [vmem:[%s3459_s8 + $0x208] sm:$0xff]  ;;  %v1827_v9 = vld [vmem:[%s3459_s8 + $0x98] sm:$0xff] }
  0x56   : > { %v2757_v10 = vpack.c.bf16 %v1892_v7, %v1891_v5  ;;  %v2633_v11 = vpack.c.bf16 %v1827_v9, %v1826_v8  ;;  %v1893_v12 = vld [vmem:[%s3459_s8 + $0x210] sm:$0xff]  ;;  %v1894_v13 = vld [vmem:[%s3459_s8 + $0x218] sm:$0xff]  ;;  %v1828_v14 = vld [vmem:[%s3459_s8 + $0xa0] sm:$0xff] }
  0x57   : > { %2630 = vmatprep.subr.bf16.mxu1 %v2629_v6  ;;  %v2761_v15 = vpack.c.bf16 %v1894_v13, %v1893_v12  ;;  %v1829_v16 = vld [vmem:[%s3459_s8 + $0xa8] sm:$0xff]  ;;  %v1895_v17 = vld [vmem:[%s3459_s8 + $0x220] sm:$0xff]  ;;  %v1830_v21 = vld [vmem:[%s3459_s8 + $0xb0] sm:$0xff] }
  0x58   : > { %v1896_v18 = vld [vmem:[%s3459_s8 + $0x228] sm:$0xff]  ;;  %2758 = vmatprep.subr.bf16.mxu0 %v2757_v10  ;;  %2632 = vmatpush3.bf16.msra.mxu1 %v2629_v6  ;;  %v2637_v19 = vpack.c.bf16 %v1829_v16, %v1828_v14  ;;  %v1831_v22 = vld [vmem:[%s3459_s8 + $0xb8] sm:$0xff]  ;;  %v1897_v23 = vld [vmem:[%s3459_s8 + $0x230] sm:$0xff] }
  0x59   : > { %2760 = vmatpush3.bf16.msra.mxu0 %v2757_v10  ;;  %2634 = vmatprep.subr.bf16.mxu1 %v2633_v11  ;;  %v2765_v20 = vpack.c.bf16 %v1896_v18, %v1895_v17  ;;  %v1898_v24 = vld [vmem:[%s3459_s8 + $0x238] sm:$0xff]  ;;  %v2641_v25 = vpack.c.bf16 %v1831_v22, %v1830_v21  ;;  %v1832_v27 = vld [vmem:[%s3459_s8 + $0xc0] sm:$0xff]  ;;  %v1833_v28 = vld [vmem:[%s3459_s8 + $0xc8] sm:$0xff] }
  0x5a   : > { %2762 = vmatprep.subr.bf16.mxu0 %v2761_v15  ;;  %v2769_v26 = vpack.c.bf16 %v1898_v24, %v1897_v23  ;;  %v1899_v29 = vld [vmem:[%s3459_s8 + $0x240] sm:$0xff]  ;;  %v1900_v30 = vld [vmem:[%s3459_s8 + $0x248] sm:$0xff]  ;;  %v2645_v31 = vpack.c.bf16 %v1833_v28, %v1832_v27  ;;  %v1834_v33 = vld [vmem:[%s3459_s8 + $0xd0] sm:$0xff] }
  0x5b   : > { %v2773_v32 = vpack.c.bf16 %v1900_v30, %v1899_v29  ;;  %v1835_v34 = vld [vmem:[%s3459_s8 + $0xd8] sm:$0xff]  ;;  %v1901_v35 = vld [vmem:[%s3459_s8 + $0x250] sm:$0xff]  ;;  %v1836_v39 = vld [vmem:[%s3459_s8 + $0xe0] sm:$0xff] }
  0x5c   : > { %2636 = vmatpush3.bf16.msra.mxu1 %v2633_v11  ;;  %v1902_v36 = vld [vmem:[%s3459_s8 + $0x258] sm:$0xff]  ;;  %v2649_v37 = vpack.c.bf16 %v1835_v34, %v1834_v33  ;;  %v1837_v40 = vld [vmem:[%s3459_s8 + $0xe8] sm:$0xff]  ;;  %v1903_v41 = vld [vmem:[%s3459_s8 + $0x260] sm:$0xff] }
  0x5d   : > { %2764 = vmatpush3.bf16.msra.mxu0 %v2761_v15  ;;  %2638 = vmatprep.subr.bf16.mxu1 %v2637_v19  ;;  %v2777_v38 = vpack.c.bf16 %v1902_v36, %v1901_v35  ;;  %v1904_v42 = vld [vmem:[%s3459_s8 + $0x268] sm:$0xff]  ;;  %v2653_v43 = vpack.c.bf16 %v1837_v40, %v1836_v39  ;;  %v1838_v45 = vld [vmem:[%s3459_s8 + $0xf0] sm:$0xff]  ;;  %v1839_v46 = vld [vmem:[%s3459_s8 + $0xf8] sm:$0xff] }
  0x5e   : > { %2766 = vmatprep.subr.bf16.mxu0 %v2765_v20  ;;  %v2781_v44 = vpack.c.bf16 %v1904_v42, %v1903_v41  ;;  %v1905_v47 = vld [vmem:[%s3459_s8 + $0x270] sm:$0xff]  ;;  %v1906_v48 = vld [vmem:[%s3459_s8 + $0x278] sm:$0xff]  ;;  %v2657_v49 = vpack.c.bf16 %v1839_v46, %v1838_v45  ;;  %v280_v51 = vld [vmem:[%s3459_s8] sm:$0xff] }
  0x5f   : > { %v2785_v50 = vpack.c.bf16 %v1906_v48, %v1905_v47  ;;  %v281_v52 = vld [vmem:[%s3459_s8 + $0x8] sm:$0xff]  ;;  %v1916_v53 = vld [vmem:[%s3459_s8 + $0x280] sm:$0xff]  ;;  %v282_v57 = vld [vmem:[%s3459_s8 + $0x10] sm:$0xff] }
  0x60   : > { %2640 = vmatpush3.bf16.msra.mxu1 %v2637_v19  ;;  %v1917_v54 = vld [vmem:[%s3459_s8 + $0x288] sm:$0xff]  ;;  %v2661_v55 = vpack.c.bf16 %v281_v52, %v280_v51  ;;  %v283_v58 = vld [vmem:[%s3459_s8 + $0x18] sm:$0xff]  ;;  %v1918_v59 = vld [vmem:[%s3459_s8 + $0x290] sm:$0xff] }
  0x61   : > { %2768 = vmatpush3.bf16.msra.mxu0 %v2765_v20  ;;  %2642 = vmatprep.subr.bf16.mxu1 %v2641_v25  ;;  %v2789_v56 = vpack.c.bf16 %v1917_v54, %v1916_v53  ;;  %v1919_v60 = vld [vmem:[%s3459_s8 + $0x298] sm:$0xff]  ;;  %v2665_v62 = vpack.c.bf16 %v283_v58, %v282_v57  ;;  %v284_v0 = vld [vmem:[%s3459_s8 + $0x20] sm:$0xff]  ;;  %v285_v1 = vld [vmem:[%s3459_s8 + $0x28] sm:$0xff] }
  0x62   : > { %2770 = vmatprep.subr.bf16.mxu0 %v2769_v26  ;;  %v2793_v63 = vpack.c.bf16 %v1919_v60, %v1918_v59  ;;  %v1920_v3 = vld [vmem:[%s3459_s8 + $0x2a0] sm:$0xff]  ;;  %v1921_v4 = vld [vmem:[%s3459_s8 + $0x2a8] sm:$0xff]  ;;  %v3511_v5 = vld [vmem:[%s3446_s26 + $0x31] sm:$0xff]  ;;  %v2669_v6 = vpack.c.bf16 %v285_v1, %v284_v0 }
  0x63   : > { %v3514_v7 = vld [vmem:[%s3446_s26 + $0x41] sm:$0xff]  ;;  %v2797_v8 = vpack.c.bf16 %v1921_v4, %v1920_v3  ;;  %v286_v9 = vld [vmem:[%s3459_s8 + $0x30] sm:$0xff]  ;;  %v1923_v11 = vld [vmem:[%s3459_s8 + $0x2b8] sm:$0xff] }
  0x64   : > { %2644 = vmatpush3.bf16.msra.mxu1 %v2641_v25  ;;  %v1922_v10 = vld [vmem:[%s3459_s8 + $0x2b0] sm:$0xff]  ;;  %v3528_v14 = vld [vmem:[%s3446_s26 + $0x61] sm:$0xff]  ;;  %v291_v25 = vld [vmem:[%s3459_s8 + $0x58] sm:$0xff] }
  0x65   : > { %2772 = vmatpush3.bf16.msra.mxu0 %v2769_v26  ;;  %2646 = vmatprep.subr.bf16.mxu1 %v2645_v31  ;;  %v3525_v12 = vld [vmem:[%s3446_s26 + $0x51] sm:$0xff]  ;;  %v2801_v15 = vpack.c.bf16 %v1923_v11, %v1922_v10  ;;  %v288_v16 = vld [vmem:[%s3459_s8 + $0x40] sm:$0xff]  ;;  %v289_v17 = vld [vmem:[%s3459_s8 + $0x48] sm:$0xff] }
  0x66   : > { %2774 = vmatprep.subr.bf16.mxu0 %v2773_v32  ;;  %v1924_v18 = vld [vmem:[%s3459_s8 + $0x2c0] sm:$0xff]  ;;  %v1925_v19 = vld [vmem:[%s3459_s8 + $0x2c8] sm:$0xff]  ;;  %v3539_v20 = vld [vmem:[%s3446_s26 + $0x71] sm:$0xff]  ;;  %v2677_v21 = vpack.c.bf16 %v289_v17, %v288_v16 }
  0x67   : > { %v3542_v22 = vld [vmem:[%s3446_s26 + $0x81] sm:$0xff]  ;;  %v2805_v23 = vpack.c.bf16 %v1925_v19, %v1924_v18  ;;  %v290_v24 = vld [vmem:[%s3459_s8 + $0x50] sm:$0xff]  ;;  %v1927_v27 = vld [vmem:[%s3459_s8 + $0x2d8] sm:$0xff] }
  0x68   : > { %2648 = vmatpush3.bf16.msra.mxu1 %v2645_v31  ;;  %v1926_v26 = vld [vmem:[%s3459_s8 + $0x2d0] sm:$0xff]  ;;  %v269_v28 = vld [vmem:[%s3446_s26] sm:$0xff]  ;;  %v2681_v30 = vpack.c.bf16 %v291_v25, %v290_v24  ;;  %v293_v33 = vld [vmem:[%s3459_s8 + $0x68] sm:$0xff] }
  0x69   : > { %2776 = vmatpush3.bf16.msra.mxu0 %v2773_v32  ;;  %2650 = vmatprep.subr.bf16.mxu1 %v2649_v37  ;;  %v3554_v29 = vld [vmem:[%s3446_s26 + $0x12] sm:$0xff]  ;;  %v2809_v31 = vpack.c.bf16 %v1927_v27, %v1926_v26  ;;  %v292_v32 = vld [vmem:[%s3459_s8 + $0x60] sm:$0xff]  ;;  %v1929_v35 = vld [vmem:[%s3459_s8 + $0x2e8] sm:$0xff] }
  0x6a   : > { %2778 = vmatprep.subr.bf16.mxu0 %v2777_v38  ;;  %v1928_v34 = vld [vmem:[%s3459_s8 + $0x2e0] sm:$0xff]  ;;  %v2685_v36 = vpack.c.bf16 %v293_v33, %v292_v32  ;;  %v295_v39 = vld [vmem:[%s3459_s8 + $0x78] sm:$0xff]  ;;  %v1930_v40 = vld [vmem:[%s3459_s8 + $0x2f0] sm:$0xff] }
  0x6b   : > { %v1931_v41 = vld [vmem:[%s3459_s8 + $0x2f8] sm:$0xff]  ;;  %v1842_v45 = vld [vmem:[%s3459_s8 + $0x108] sm:$0xff]  ;;  %v1941_v46 = vld [vmem:[%s3459_s8 + $0x300] sm:$0xff] }
  0x6c   : > { %2652 = vmatpush3.bf16.msra.mxu1 %v2649_v37  ;;  %v2813_v37 = vpack.c.bf16 %v1929_v35, %v1928_v34  ;;  %v1942_v47 = vld [vmem:[%s3459_s8 + $0x308] sm:$0xff]  ;;  %v1844_v51 = vld [vmem:[%s3459_s8 + $0x118] sm:$0xff]  ;;  %v1943_v52 = vld [vmem:[%s3459_s8 + $0x310] sm:$0xff] }
  0x6d   : > { %2780 = vmatpush3.bf16.msra.mxu0 %v2777_v38  ;;  %2654 = vmatprep.subr.bf16.mxu1 %v2653_v43  ;;  %v294_v38 = vld [vmem:[%s3459_s8 + $0x70] sm:$0xff]  ;;  %v1944_v53 = vld [vmem:[%s3459_s8 + $0x318] sm:$0xff]  ;;  %v1845_v58 = vld [vmem:[%s3459_s8 + $0x120] sm:$0xff] }
  0x6e   : > { %2782 = vmatprep.subr.bf16.mxu0 %v2781_v44  ;;  %v2689_v42 = vpack.c.bf16 %v295_v39, %v294_v38  ;;  %v3574_v54 = vld [vmem:[%s3446_s26 + $0x10] sm:$0xff]  ;;  %v2825_v57 = vpack.c.bf16 %v1944_v53, %v1943_v52  ;;  %v1846_v59 = vld [vmem:[%s3459_s8 + $0x128] sm:$0xff]  ;;  %v1945_v60 = vld [vmem:[%s3459_s8 + $0x320] sm:$0xff] }
  0x6f   : > { %v3589_v0 = vld [vmem:[%s3446_s26 + $0x32] sm:$0xff]  ;;  %v2701_v3 = vpack.c.bf16 %v1846_v59, %v1845_v58  ;;  %v3595_v4 = vld [vmem:[%s3446_s26 + $0x42] sm:$0xff] }
  0x70   : > { %2656 = vmatpush3.bf16.msra.mxu1 %v2653_v43  ;;  %v2817_v43 = vpack.c.bf16 %v1931_v41, %v1930_v40  ;;  %v3592_v1 = vld [vmem:[%s3446_s26 + $0x30] sm:$0xff]  ;;  %v1948_v10 = vld [vmem:[%s3459_s8 + $0x338] sm:$0xff]  ;;  %v3605_v11 = vld [vmem:[%s3446_s26 + $0x40] sm:$0xff] }
  0x71   : > { %2784 = vmatpush3.bf16.msra.mxu0 %v2781_v44  ;;  %2658 = vmatprep.subr.bf16.mxu1 %v2657_v49  ;;  %v1841_v44 = vld [vmem:[%s3459_s8 + $0x100] sm:$0xff]  ;;  %v1950_v24 = vld [vmem:[%s3459_s8 + $0x348] sm:$0xff]  ;;  %v3629_v26 = vld [vmem:[%s3446_s26 + $0x72] sm:$0xff] }
  0x72   : > { %2786 = vmatprep.subr.bf16.mxu0 %v2785_v50  ;;  %v2693_v48 = vpack.c.bf16 %v1842_v45, %v1841_v44  ;;  %v3615_v17 = vld [vmem:[%s3446_s26 + $0x62] sm:$0xff]  ;;  %v3632_v27 = vld [vmem:[%s3446_s26 + $0x70] sm:$0xff]  ;;  %v1852_v33 = vld [vmem:[%s3459_s8 + $0x158] sm:$0xff] }
  0x73   : > { %v1849_v19 = vld [vmem:[%s3459_s8 + $0x140] sm:$0xff]  ;;  %v1851_v32 = vld [vmem:[%s3459_s8 + $0x150] sm:$0xff]  ;;  %v1952_v35 = vld [vmem:[%s3459_s8 + $0x358] sm:$0xff] }
  0x74   : > { %2660 = vmatpush3.bf16.msra.mxu1 %v2657_v49  ;;  %v2821_v49 = vpack.c.bf16 %v1942_v47, %v1941_v46  ;;  %v3625_v25 = vld [vmem:[%s3446_s26 + $0x60] sm:$0xff]  ;;  %v1951_v34 = vld [vmem:[%s3459_s8 + $0x350] sm:$0xff]  ;;  %v1854_v40 = vld [vmem:[%s3459_s8 + $0x168] sm:$0xff] }
  0x75   : > { %2788 = vmatpush3.bf16.msra.mxu0 %v2785_v50  ;;  %2662 = vmatprep.subr.bf16.mxu1 %v2661_v55  ;;  %v1843_v50 = vld [vmem:[%s3459_s8 + $0x110] sm:$0xff]  ;;  %v2841_v38 = vpack.c.bf16 %v1952_v35, %v1951_v34  ;;  %v1853_v39 = vld [vmem:[%s3459_s8 + $0x160] sm:$0xff]  ;;  %v1856_v46 = vld [vmem:[%s3459_s8 + $0x178] sm:$0xff] }
  0x76   : > { %2790 = vmatprep.subr.bf16.mxu0 %v2789_v56  ;;  %v1953_v41 = vld [vmem:[%s3459_s8 + $0x360] sm:$0xff]  ;;  %v1855_v45 = vld [vmem:[%s3459_s8 + $0x170] sm:$0xff]  ;;  %v1867_v52 = vld [vmem:[%s3459_s8 + $0x188] sm:$0xff] }
  0x77   : > { %2266 = vmatmul.mubr.f32.vlgmr.msra.gmra.mrb[0].mxu1 %v3456_v2  ;;  %v287_v2 = vld [vmem:[%s3459_s8 + $0x38] sm:$0xff]  ;;  %v1955_v47 = vld [vmem:[%s3459_s8 + $0x370] sm:$0xff]  ;;  %v1966_v53 = vld [vmem:[%s3459_s8 + $0x380] sm:$0xff] }
  0x78   : > { %2664 = vmatpush3.bf16.msra.mxu1 %v2661_v55  ;;  %2442 = vmatmul.mubr.f32.vlgmr.msra.gmra.mrb[0].mxu0 %v3502_v61  ;;  %v2673_v13 = vpack.c.bf16 %v287_v2, %v286_v9  ;;  %v3577_v55 = vld [vmem:[%s3446_s26 + $0x22] sm:$0xff]  ;;  %v1848_v9 = vld [vmem:[%s3459_s8 + $0x138] sm:$0xff]  ;;  %v1947_v2 = vld [vmem:[%s3459_s8 + $0x330] sm:$0xff] }
  0x79   : > { %2792 = vmatpush3.bf16.msra.mxu0 %v2789_v56  ;;  %2666 = vmatprep.subr.bf16.mxu1 %v2665_v62  ;;  %v2697_v56 = vpack.c.bf16 %v1844_v51, %v1843_v50  ;;  %v2833_v18 = vpack.c.bf16 %v1948_v10, %v1947_v2  ;;  %v1866_v51 = vld [vmem:[%s3459_s8 + $0x180] sm:$0xff]  ;;  %v1868_v59 = vld [vmem:[%s3459_s8 + $0x190] sm:$0xff]  ;;  %v1871_v2 = vld [vmem:[%s3459_s8 + $0x1a8] sm:$0xff] }
  0x7a   : > { %2794 = vmatprep.subr.bf16.mxu0 %v2793_v63  ;;  %2268 = vmatprep.mubr.f32.mxu1 %v3502_v61  ;;  %v1970_v10 = vld [vmem:[%s3459_s8 + $0x3a0] sm:$0xff]  ;;  %v1975_v35 = vld [vmem:[%s3459_s8 + $0x3c8] sm:$0xff] }
  0x7b   : > { %2444 = vmatprep.mubr.f32.mxu0 %v3511_v5  ;;  %2269 = vmatmul.mubr.f32.gmra.mrb[2].mxu1 %v3511_v5  ;;  %v1974_v34 = vld [vmem:[%s3459_s8 + $0x3c0] sm:$0xff] }
  0x7c   : > { %2668 = vmatpush3.bf16.msra.mxu1 %v2665_v62  ;;  %2445 = vmatmul.mubr.f32.gmra.mrb[2].mxu0 %v3514_v7  ;;  %v1946_v62 = vld [vmem:[%s3459_s8 + $0x328] sm:$0xff] }
  0x7d   : > { %2796 = vmatpush3.bf16.msra.mxu0 %v2793_v63  ;;  %2670 = vmatprep.subr.bf16.mxu1 %v2669_v6  ;;  %v3585_v63 = vld [vmem:[%s3446_s26 + $0x20] sm:$0xff] }
  0x7e   : > { %2798 = vmatprep.subr.bf16.mxu0 %v2797_v8  ;;  %2271 = vmatprep.mubr.f32.mxu1 %v3514_v7 }
  0x7f   : > { %2447 = vmatprep.mubr.f32.mxu0 %v3525_v12  ;;  %2272 = vmatmul.mubr.f32.gmra.mrb[4].mxu1 %v3525_v12 }
  0x80   : > { %2672 = vmatpush3.bf16.msra.mxu1 %v2669_v6  ;;  %2448 = vmatmul.mubr.f32.gmra.mrb[4].mxu0 %v3528_v14  ;;  %v2829_v6 = vpack.c.bf16 %v1946_v62, %v1945_v60  ;;  %v1869_v60 = vld [vmem:[%s3459_s8 + $0x198] sm:$0xff]  ;;  %v1968_v62 = vld [vmem:[%s3459_s8 + $0x390] sm:$0xff] }
  0x81   : > { %2800 = vmatpush3.bf16.msra.mxu0 %v2797_v8  ;;  %2674 = vmatprep.subr.bf16.mxu1 %v2673_v13  ;;  %v1847_v8 = vld [vmem:[%s3459_s8 + $0x130] sm:$0xff] }
  0x82   : > { %2802 = vmatprep.subr.bf16.mxu0 %v2801_v15  ;;  %2274 = vmatprep.mubr.f32.mxu1 %v3528_v14  ;;  %v2705_v16 = vpack.c.bf16 %v1848_v9, %v1847_v8  ;;  %v1870_v9 = vld [vmem:[%s3459_s8 + $0x1a0] sm:$0xff] }
  0x83   : > { %2450 = vmatprep.mubr.f32.mxu0 %v3539_v20  ;;  %2275 = vmatmul.mubr.f32.gmra.mrb[6].mxu1 %v3539_v20 }
  0x84   : > { %2676 = vmatpush3.bf16.msra.mxu1 %v2673_v13  ;;  %2451 = vmatmul.mubr.f32.gmra.mrb[6].mxu0 %v3542_v22  ;;  %v3609_v13 = vld [vmem:[%s3446_s26 + $0x52] sm:$0xff] }
  0x85   : > { %2804 = vmatpush3.bf16.msra.mxu0 %v2801_v15  ;;  %2678 = vmatprep.subr.bf16.mxu1 %v2677_v21  ;;  %v3612_v15 = vld [vmem:[%s3446_s26 + $0x50] sm:$0xff] }
  0x86   : > { %2806 = vmatprep.subr.bf16.mxu0 %v2805_v23  ;;  %2309 = vmatprep.mubr.f32.mxu1 %v269_v28 }
  0x87   : > { %2485 = vmatprep.mubr.f32.mxu0 %v3554_v29 }
  0x88   : > { %2680 = vmatpush3.bf16.msra.mxu1 %v2677_v21  ;;  %v1850_v21 = vld [vmem:[%s3459_s8 + $0x148] sm:$0xff] }
  0x89   : > { %2808 = vmatpush3.bf16.msra.mxu0 %v2805_v23  ;;  %2682 = vmatprep.subr.bf16.mxu1 %v2681_v30  ;;  %v1949_v23 = vld [vmem:[%s3459_s8 + $0x340] sm:$0xff]  ;;  %v2709_v28 = vpack.c.bf16 %v1850_v21, %v1849_v19  ;;  %v1872_v21 = vld [vmem:[%s3459_s8 + $0x1b0] sm:$0xff] }
  0x8a   : > { %2810 = vmatprep.subr.bf16.mxu0 %v2809_v31 }
  0x8c   : > { %2684 = vmatpush3.bf16.msra.mxu1 %v2681_v30  ;;  %v3635_v30 = vld [vmem:[%s3446_s26 + $0x82] sm:$0xff] }
  0x8d   : > { %2812 = vmatpush3.bf16.msra.mxu0 %v2809_v31  ;;  %2686 = vmatprep.subr.bf16.mxu1 %v2685_v36  ;;  %v2837_v31 = vpack.c.bf16 %v1950_v24, %v1949_v23  ;;  %v1873_v23 = vld [vmem:[%s3459_s8 + $0x1b8] sm:$0xff]  ;;  %v1972_v24 = vld [vmem:[%s3459_s8 + $0x3b0] sm:$0xff] }
  0x8e   : > { %2814 = vmatprep.subr.bf16.mxu0 %v2813_v37 }
  0x90   : > { %2688 = vmatpush3.bf16.msra.mxu1 %v2685_v36  ;;  %v533_v36 = vld [vmem:[%s3446_s26 + $0x2] sm:$0xff] }
  0x91   : > { %2816 = vmatpush3.bf16.msra.mxu0 %v2813_v37  ;;  %2690 = vmatprep.subr.bf16.mxu1 %v2689_v42  ;;  %v2713_v37 = vpack.c.bf16 %v1852_v33, %v1851_v32  ;;  %v1874_v32 = vld [vmem:[%s3459_s8 + $0x1c0] sm:$0xff]  ;;  %v1875_v33 = vld [vmem:[%s3459_s8 + $0x1c8] sm:$0xff] }
  0x92   : > { %2818 = vmatprep.subr.bf16.mxu0 %v2817_v43 }
  0x94   : > { %2692 = vmatpush3.bf16.msra.mxu1 %v2689_v42  ;;  %v1954_v42 = vld [vmem:[%s3459_s8 + $0x368] sm:$0xff] }
  0x95   : > { %2820 = vmatpush3.bf16.msra.mxu0 %v2817_v43  ;;  %2694 = vmatprep.subr.bf16.mxu1 %v2693_v48  ;;  %v2717_v43 = vpack.c.bf16 %v1854_v40, %v1853_v39  ;;  %v2845_v44 = vpack.c.bf16 %v1954_v42, %v1953_v41  ;;  %v2869_v39 = vpack.c.bf16 %v1975_v35, %v1974_v34  ;;  %v1876_v40 = vld [vmem:[%s3459_s8 + $0x1d0] sm:$0xff]  ;;  %v1877_v41 = vld [vmem:[%s3459_s8 + $0x1d8] sm:$0xff] }
  0x96   : > { %2822 = vmatprep.subr.bf16.mxu0 %v2821_v49  ;;  %v1976_v42 = vld [vmem:[%s3459_s8 + $0x3d0] sm:$0xff] }
  0x97   : > { %2310 = vmatmul.mubr.f32.vlgmr.msra.gmra.mrb[0].mxu1 %v3574_v54 }
  0x98   : > { %2696 = vmatpush3.bf16.msra.mxu1 %v2693_v48  ;;  %2486 = vmatmul.mubr.f32.vlgmr.msra.gmra.mrb[0].mxu0 %v3577_v55  ;;  %v1956_v48 = vld [vmem:[%s3459_s8 + $0x378] sm:$0xff] }
  0x99   : > { %2824 = vmatpush3.bf16.msra.mxu0 %v2821_v49  ;;  %2698 = vmatprep.subr.bf16.mxu1 %v2697_v56  ;;  %v2721_v49 = vpack.c.bf16 %v1856_v46, %v1855_v45  ;;  %v2849_v50 = vpack.c.bf16 %v1956_v48, %v1955_v47  ;;  %v1878_v46 = vld [vmem:[%s3459_s8 + $0x1e0] sm:$0xff]  ;;  %v1879_v47 = vld [vmem:[%s3459_s8 + $0x1e8] sm:$0xff] }
  0x9a   : > { %2826 = vmatprep.subr.bf16.mxu0 %v2825_v57  ;;  %2312 = vmatprep.mubr.f32.mxu1 %v3585_v63  ;;  %v1978_v48 = vld [vmem:[%s3459_s8 + $0x3e0] sm:$0xff] }
  0x9b   : > { %2488 = vmatprep.mubr.f32.mxu0 %v3589_v0  ;;  %2313 = vmatmul.mubr.f32.gmra.mrb[2].mxu1 %v3592_v1 }
  0x9c   : > { %2700 = vmatpush3.bf16.msra.mxu1 %v2697_v56  ;;  %2489 = vmatmul.mubr.f32.gmra.mrb[2].mxu0 %v3595_v4  ;;  %v1967_v56 = vld [vmem:[%s3459_s8 + $0x388] sm:$0xff] }
  0x9d   : > { %2828 = vmatpush3.bf16.msra.mxu0 %v2825_v57  ;;  %2702 = vmatprep.subr.bf16.mxu1 %v2701_v3  ;;  %v2725_v57 = vpack.c.bf16 %v1867_v52, %v1866_v51  ;;  %v2853_v58 = vpack.c.bf16 %v1967_v56, %v1966_v53  ;;  %v1880_v52 = vld [vmem:[%s3459_s8 + $0x1f0] sm:$0xff]  ;;  %v1881_v53 = vld [vmem:[%s3459_s8 + $0x1f8] sm:$0xff] }
  0x9e   : > { %2830 = vmatprep.subr.bf16.mxu0 %v2829_v6  ;;  %2315 = vmatprep.mubr.f32.mxu1 %v3605_v11  ;;  %v1980_v56 = vld [vmem:[%s3459_s8 + $0x3f0] sm:$0xff] }
  0x9f   : > { %2491 = vmatprep.mubr.f32.mxu0 %v3609_v13  ;;  %2316 = vmatmul.mubr.f32.gmra.mrb[4].mxu1 %v3612_v15 }
  0xa0   : > { %2704 = vmatpush3.bf16.msra.mxu1 %v2701_v3  ;;  %2492 = vmatmul.mubr.f32.gmra.mrb[4].mxu0 %v3615_v17  ;;  %v1969_v3 = vld [vmem:[%s3459_s8 + $0x398] sm:$0xff] }
  0xa1   : > { %2832 = vmatpush3.bf16.msra.mxu0 %v2829_v6  ;;  %2706 = vmatprep.subr.bf16.mxu1 %v2705_v16  ;;  %v2729_v6 = vpack.c.bf16 %v1869_v60, %v1868_v59  ;;  %v2857_v8 = vpack.c.bf16 %v1969_v3, %v1968_v62  ;;  %v1992_v59 = vld [vmem:[%s3459_s8 + $0x408] sm:$0xff]  ;;  %v1993_v62 = vld [vmem:[%s3459_s8 + $0x410] sm:$0xff]  ;;  %v1994_v3 = vld [vmem:[%s3459_s8 + $0x418] sm:$0xff] }
  0xa2   : > { %2834 = vmatprep.subr.bf16.mxu0 %v2833_v18  ;;  %2318 = vmatprep.mubr.f32.mxu1 %v3625_v25 }
  0xa3   : > { %2494 = vmatprep.mubr.f32.mxu0 %v3629_v26  ;;  %2319 = vmatmul.mubr.f32.gmra.mrb[6].mxu1 %v3632_v27 }
  0xa4   : > { %2708 = vmatpush3.bf16.msra.mxu1 %v2705_v16  ;;  %2495 = vmatmul.mubr.f32.gmra.mrb[6].mxu0 %v3635_v30  ;;  %v1971_v16 = vld [vmem:[%s3459_s8 + $0x3a8] sm:$0xff] }
  0xa5   : > { %2836 = vmatpush3.bf16.msra.mxu0 %v2833_v18  ;;  %2710 = vmatprep.subr.bf16.mxu1 %v2709_v28  ;;  %v2733_v18 = vpack.c.bf16 %v1871_v2, %v1870_v9  ;;  %v2861_v19 = vpack.c.bf16 %v1971_v16, %v1970_v10  ;;  %v1996_v9 = vld [vmem:[%s3459_s8 + $0x428] sm:$0xff]  ;;  %v1997_v10 = vld [vmem:[%s3459_s8 + $0x430] sm:$0xff]  ;;  %v1998_v16 = vld [vmem:[%s3459_s8 + $0x438] sm:$0xff] }
  0xa6   : > { %2838 = vmatprep.subr.bf16.mxu0 %v2837_v31  ;;  %2353 = vmatprep.mubr.f32.mxu1 %v533_v36  ;;  %v3686_v36 = vld [vmem:[%s3446_s26 + $0x80] sm:$0xff] }
  0xa7   : > { %2529 = vmatprep.mubr.f32.mxu0 %v3585_v63 }
  0xa8   : > { %2712 = vmatpush3.bf16.msra.mxu1 %v2709_v28  ;;  %v2737_v28 = vpack.c.bf16 %v1873_v23, %v1872_v21 }
  0xa9   : > { %2840 = vmatpush3.bf16.msra.mxu0 %v2837_v31  ;;  %2714 = vmatprep.subr.bf16.mxu1 %v2713_v37 }
  0xaa   : > { %2842 = vmatprep.subr.bf16.mxu0 %v2841_v38 }
  0xac   : > { %2716 = vmatpush3.bf16.msra.mxu1 %v2713_v37  ;;  %v2741_v37 = vpack.c.bf16 %v1875_v33, %v1874_v32 }
  0xad   : > { %2844 = vmatpush3.bf16.msra.mxu0 %v2841_v38  ;;  %2718 = vmatprep.subr.bf16.mxu1 %v2717_v43  ;;  %v1939_v38 = vld [vmem:[%s3446_s26 + $0x90] sm:$0xff] }
  0xae   : > { %2846 = vmatprep.subr.bf16.mxu0 %v2845_v44 }
  0xb0   : > { %2720 = vmatpush3.bf16.msra.mxu1 %v2717_v43  ;;  %v1977_v43 = vld [vmem:[%s3459_s8 + $0x3d8] sm:$0xff] }
  0xb1   : > { %2848 = vmatpush3.bf16.msra.mxu0 %v2845_v44  ;;  %2722 = vmatprep.subr.bf16.mxu1 %v2721_v49  ;;  %v2745_v44 = vpack.c.bf16 %v1877_v41, %v1876_v40  ;;  %v2873_v45 = vpack.c.bf16 %v1977_v43, %v1976_v42  ;;  %v1519_v42 = vld [vmem:[#allocation2 + $0x20] sm:$0xff] }
  0xb2   : > { %2850 = vmatprep.subr.bf16.mxu0 %v2849_v50 }
  0xb4   : > { %2724 = vmatpush3.bf16.msra.mxu1 %v2721_v49  ;;  %v1979_v49 = vld [vmem:[%s3459_s8 + $0x3e8] sm:$0xff] }
  0xb5   : > { %2852 = vmatpush3.bf16.msra.mxu0 %v2849_v50  ;;  %2726 = vmatprep.subr.bf16.mxu1 %v2725_v57  ;;  %v2749_v50 = vpack.c.bf16 %v1879_v47, %v1878_v46  ;;  %v2877_v51 = vpack.c.bf16 %v1979_v49, %v1978_v48 }
  0xb6   : > { %2854 = vmatprep.subr.bf16.mxu0 %v2853_v58 }
  0xb7   : > { %2354 = vmatmul.mubr.f32.vlgmr.msra.gmra.mrb[0].mxu1 %v3554_v29  ;;  %v1973_v29 = vld [vmem:[%s3459_s8 + $0x3b8] sm:$0xff] }
  0xb8   : > { %2728 = vmatpush3.bf16.msra.mxu1 %v2725_v57  ;;  %2530 = vmatmul.mubr.f32.vlgmr.msra.gmra.mrb[0].mxu0 %v3592_v1  ;;  %v2865_v31 = vpack.c.bf16 %v1973_v29, %v1972_v24  ;;  %v1981_v57 = vld [vmem:[%s3459_s8 + $0x3f8] sm:$0xff] }
  0xb9   : > { %2856 = vmatpush3.bf16.msra.mxu0 %v2853_v58  ;;  %2730 = vmatprep.subr.bf16.mxu1 %v2729_v6  ;;  %v1991_v58 = vld [vmem:[%s3459_s8 + $0x400] sm:$0xff] }
  0xba   : > { %2858 = vmatprep.subr.bf16.mxu0 %v2857_v8  ;;  %2356 = vmatprep.mubr.f32.mxu1 %v3577_v55  ;;  %v2885_v60 = vpack.c.bf16 %v1992_v59, %v1991_v58  ;;  %v1521_v58 = vld [vmem:[#allocation2 + $0x30] sm:$0xff] }
  0xbb   : > { %2532 = vmatprep.mubr.f32.mxu0 %v3605_v11  ;;  %2357 = vmatmul.mubr.f32.gmra.mrb[2].mxu1 %v3589_v0 }
  0xbc   : > { %2732 = vmatpush3.bf16.msra.mxu1 %v2729_v6  ;;  %2533 = vmatmul.mubr.f32.gmra.mrb[2].mxu0 %v3612_v15  ;;  %v2889_v6 = vpack.c.bf16 %v1994_v3, %v1993_v62  ;;  %v1517_v62 = vld [vmem:[#allocation2 + $0x10] sm:$0xff] }
  0xbd   : > { %2860 = vmatpush3.bf16.msra.mxu0 %v2857_v8  ;;  %2734 = vmatprep.subr.bf16.mxu1 %v2733_v18  ;;  %v1995_v8 = vld [vmem:[%s3459_s8 + $0x420] sm:$0xff] }
  0xbe   : > { %2862 = vmatprep.subr.bf16.mxu0 %v2861_v19  ;;  %2359 = vmatprep.mubr.f32.mxu1 %v3595_v4  ;;  %v2893_v2 = vpack.c.bf16 %v1996_v9, %v1995_v8 }
  0xbf   : > { %2535 = vmatprep.mubr.f32.mxu0 %v3625_v25  ;;  %2360 = vmatmul.mubr.f32.gmra.mrb[4].mxu1 %v3609_v13 }
  0xc0   : > { %2736 = vmatpush3.bf16.msra.mxu1 %v2733_v18  ;;  %2536 = vmatmul.mubr.f32.gmra.mrb[4].mxu0 %v3632_v27  ;;  %v2006_v18 = vld [vmem:[%s3459_s8 + $0x478] sm:$0xff] }
  0xc1   : > { %2864 = vmatpush3.bf16.msra.mxu0 %v2861_v19  ;;  %2738 = vmatprep.subr.bf16.mxu1 %v2737_v28 }
  0xc2   : > { %2866 = vmatprep.subr.bf16.mxu0 %v2865_v31  ;;  %2362 = vmatprep.mubr.f32.mxu1 %v3615_v17 }
  0xc3   : > { %2538 = vmatprep.mubr.f32.mxu0 %v3686_v36  ;;  %2363 = vmatmul.mubr.f32.gmra.mrb[6].mxu1 %v3629_v26 }
  0xc4   : > { %2740 = vmatpush3.bf16.msra.mxu1 %v2737_v28  ;;  %2539 = vmatmul.mubr.f32.gmra.mrb[6].mxu0 %v1939_v38  ;;  %v1520_v38 = vld [vmem:[#allocation2 + $0x28] sm:$0xff] }
  0xc5   : > { %2868 = vmatpush3.bf16.msra.mxu0 %v2865_v31  ;;  %2742 = vmatprep.subr.bf16.mxu1 %v2741_v37 }
  0xc6   : > { %2870 = vmatprep.subr.bf16.mxu0 %v2869_v39  ;;  %2397 = vmatprep.mubr.f32.mxu1 %v3574_v54  ;;  %v2753_v54 = vpack.c.bf16 %v1881_v53, %v1880_v52  ;;  %v1522_v52 = vld [vmem:[#allocation2 + $0x38] sm:$0xff] }
  0xc7   : > { %2573 = vmatprep.mubr.f32.mxu0 %v3502_v61  ;;  %v2881_v61 = vpack.c.bf16 %v1981_v57, %v1980_v56  ;;  %v1518_v57 = vld [vmem:[#allocation2 + $0x18] sm:$0xff] }
  0xc8   : > { %2744 = vmatpush3.bf16.msra.mxu1 %v2741_v37 }
  0xc9   : > { %2872 = vmatpush3.bf16.msra.mxu0 %v2869_v39  ;;  %2746 = vmatprep.subr.bf16.mxu1 %v2745_v44 }
  0xca   : > { %2874 = vmatprep.subr.bf16.mxu0 %v2873_v45 }
  0xcc   : > { %2748 = vmatpush3.bf16.msra.mxu1 %v2745_v44 }
  0xcd   : > { %2876 = vmatpush3.bf16.msra.mxu0 %v2873_v45  ;;  %2750 = vmatprep.subr.bf16.mxu1 %v2749_v50  ;;  %v1515_v45 = vld [vmem:[#allocation2] sm:$0xff] }
  0xce   : > { %2878 = vmatprep.subr.bf16.mxu0 %v2877_v51 }
  0xd0   : > { %2752 = vmatpush3.bf16.msra.mxu1 %v2749_v50 }
  0xd1   : > { %2880 = vmatpush3.bf16.msra.mxu0 %v2877_v51  ;;  %2754 = vmatprep.subr.bf16.mxu1 %v2753_v54 }
  0xd2   : > { %2882 = vmatprep.subr.bf16.mxu0 %v2881_v61 }
  0xd4   : > { %2756 = vmatpush3.bf16.msra.mxu1 %v2753_v54 }
  0xd5   : > { %2884 = vmatpush3.bf16.msra.mxu0 %v2881_v61  ;;  %2917 = vmatprep.subr.bf16.mxu1 %v2885_v60 }
  0xd6   : > { %2886 = vmatprep.subr.bf16.mxu0 %v2885_v60 }
  0xd7   : > { %2398 = vmatmul.mubr.f32.vlgmr.msra.gmra.mrb[0].mxu1 %v3585_v63  ;;  %v2000_v63 = vld [vmem:[%s3459_s8 + $0x448] sm:$0xff] }
  0xd8   : > { %2574 = vmatmul.mubr.f32.vlgmr.msra.gmra.mrb[0].mxu0 %v3511_v5  ;;  %2925 = vmatpush3.bf16.msra.mxu1 %v2885_v60  ;;  %v2897_v5 = vpack.c.bf16 %v1998_v16, %v1997_v10 }
  0xd9   : > { %2888 = vmatpush3.bf16.msra.mxu0 %v2885_v60  ;;  %2400 = vmatprep.mubr.f32.mxu1 %v3592_v1 }
  0xda   : > { %2576 = vmatprep.mubr.f32.mxu0 %v3514_v7  ;;  %2890 = vmatprep.subr.bf16.mxu0 %v2889_v6  ;;  %v1999_v7 = vld [vmem:[%s3459_s8 + $0x440] sm:$0xff] }
  0xdb   : > { %2401 = vmatmul.mubr.f32.gmra.mrb[2].mxu1 %v3605_v11  ;;  %2918 = vmatprep.subr.bf16.mxu1 %v2889_v6  ;;  %v2901_v1 = vpack.c.bf16 %v2000_v63, %v1999_v7  ;;  %v2002_v11 = vld [vmem:[%s3459_s8 + $0x458] sm:$0xff] }
  0xdc   : > { %2577 = vmatmul.mubr.f32.gmra.mrb[2].mxu0 %v3525_v12  ;;  %2926 = vmatpush3.bf16.msra.mxu1 %v2889_v6  ;;  %v1964_v12 = vld [vmem:[%s3446_s26 + $0x91] sm:$0xff] }
  0xdd   : > { %2892 = vmatpush3.bf16.msra.mxu0 %v2889_v6  ;;  %2403 = vmatprep.mubr.f32.mxu1 %v3612_v15  ;;  %v2003_v15 = vld [vmem:[%s3459_s8 + $0x460] sm:$0xff] }
  0xde   : > { %2579 = vmatprep.mubr.f32.mxu0 %v3528_v14  ;;  %2894 = vmatprep.subr.bf16.mxu0 %v2893_v2  ;;  %v2001_v14 = vld [vmem:[%s3459_s8 + $0x450] sm:$0xff] }
  0xdf   : > { %2404 = vmatmul.mubr.f32.gmra.mrb[4].mxu1 %v3625_v25  ;;  %2919 = vmatprep.subr.bf16.mxu1 %v2893_v2  ;;  %v2004_v25 = vld [vmem:[%s3459_s8 + $0x468] sm:$0xff] }
  0xe0   : > { %2580 = vmatmul.mubr.f32.gmra.mrb[4].mxu0 %v3539_v20  ;;  %2927 = vmatpush3.bf16.msra.mxu1 %v2893_v2  ;;  %v2905_v20 = vpack.c.bf16 %v2002_v11, %v2001_v14 }
  0xe1   : > { %2896 = vmatpush3.bf16.msra.mxu0 %v2893_v2  ;;  %2406 = vmatprep.mubr.f32.mxu1 %v3632_v27  ;;  %v2005_v27 = vld [vmem:[%s3459_s8 + $0x470] sm:$0xff] }
  0xe2   : > { %2582 = vmatprep.mubr.f32.mxu0 %v3542_v22  ;;  %2898 = vmatprep.subr.bf16.mxu0 %v2897_v5  ;;  %v2909_v22 = vpack.c.bf16 %v2004_v25, %v2003_v15  ;;  %v2913_v19 = vpack.c.bf16 %v2006_v18, %v2005_v27 }
  0xe3   : > { %2407 = vmatmul.mubr.f32.gmra.mrb[6].mxu1 %v3686_v36  ;;  %2920 = vmatprep.subr.bf16.mxu1 %v2897_v5 }
  0xe4   : > { %2583 = vmatmul.mubr.f32.gmra.mrb[6].mxu0 %v1964_v12  ;;  %2928 = vmatpush3.bf16.msra.mxu1 %v2897_v5 }
  0xe5   : > { %2900 = vmatpush3.bf16.msra.mxu0 %v2897_v5  ;;  %2921 = vmatprep.subr.bf16.mxu1 %v2901_v1 }
  0xe6   : > { %2902 = vmatprep.subr.bf16.mxu0 %v2901_v1  ;;  %2617 = vmatprep.mubr.f32.mxu0 %v3577_v55  ;;  %v1989_v55 = vld [vmem:[%s3446_s26 + $0x92] sm:$0xff] }
  0xe7   : > { %2623 = vmatprep.mubr.f32.mxu1 %v3615_v17 }
  0xe8   : > { %2929 = vmatpush3.bf16.msra.mxu1 %v2901_v1 }
  0xe9   : > { %2904 = vmatpush3.bf16.msra.mxu0 %v2901_v1  ;;  %2922 = vmatprep.subr.bf16.mxu1 %v2905_v20 }
  0xea   : > { %2906 = vmatprep.subr.bf16.mxu0 %v2905_v20 }
  0xec   : > { %2930 = vmatpush3.bf16.msra.mxu1 %v2905_v20 }
  0xed   : > { %2908 = vmatpush3.bf16.msra.mxu0 %v2905_v20  ;;  %2923 = vmatprep.subr.bf16.mxu1 %v2909_v22 }
  0xee   : > { %2910 = vmatprep.subr.bf16.mxu0 %v2909_v22 }
  0xf0   : > { %2931 = vmatpush3.bf16.msra.mxu1 %v2909_v22 }
  0xf1   : > { %2912 = vmatpush3.bf16.msra.mxu0 %v2909_v22  ;;  %2924 = vmatprep.subr.bf16.mxu1 %v2913_v19 }
  0xf2   : > { %2914 = vmatprep.subr.bf16.mxu0 %v2913_v19 }
  0xf4   : > { %2932 = vmatpush3.bf16.msra.mxu1 %v2913_v19 }
  0xf5   : > { %2916 = vmatpush3.bf16.msra.mxu0 %v2913_v19 }
  0xf7   : > { %2624 = vmatmul.mubr.f32.vlgmr.msra.gmra.mrb[8].mxu1 %v3629_v26 }
  0xf8   : > { %2618 = vmatmul.mubr.f32.vlgmr.msra.gmra.mrb[0].mxu0 %v3589_v0  ;;  %2626 = vmatprep.mubr.f32.mxu1 %v3635_v30 }
  0xf9   : > { %2620 = vmatprep.mubr.f32.mxu0 %v3595_v4 }
  0xfb   : > { %2627 = vmatmul.mubr.f32.gmra.mrb[10].mxu1 %v1989_v55 }
  0xfc   : > { %2621 = vmatmul.mubr.f32.gmra.mrb[2].mxu0 %v3609_v13  ;;  %v1516_v13 = vld [vmem:[#allocation2 + $0x8] sm:$0xff] }
 0x1aa   : > { %v2399_v17 = vpop.f32.mrb[0].mxu1 }
 0x1ab   : > { %v767_v21 = vpop.f32.mrb[1].mxu1 }
 0x1ae   : > { %v2402_v23 = vpop.f32.mrb[2].mxu1 }
 0x1af   : > { %v777_v24 = vpop.f32.mrb[3].mxu1 }
 0x1b2   : > { %v2405_v29 = vpop.f32.mrb[4].mxu1 }
 0x1b3   : > { %v2581_v28 = vpop.f32.mrb[4].mxu0  ;;  %v787_v31 = vpop.f32.mrb[5].mxu1 }
 0x1b4   : > { %v2937_v32 = vadd.f32 %v2581_v28, %v2405_v29  ;;  %v1348_v33 = vpop.f32.mrb[5].mxu0 }
 0x1b5   : > { %v2939_v26 = vadd.f32 %v1348_v33, %v787_v31 }
 0x1b6   : > { %v2408_v34 = vpop.f32.mrb[6].mxu1 }
 0x1b7   : > { %v2584_v0 = vpop.f32.mrb[6].mxu0  ;;  %v797_v35 = vpop.f32.mrb[7].mxu1 }
 0x1b8   : > { %v2941_v30 = vadd.f32 %v2584_v0, %v2408_v34  ;;  %v1358_v36 = vpop.f32.mrb[7].mxu0 }
 0x1b9   : > { %v2943_v37 = vadd.f32 %v1358_v36, %v797_v35 }
 0x1ca   : > { %v2625_v4 = vpop.f32.mrb[8].mxu1 }
 0x1cb   : > { %v2619_v39 = vpop.f32.mrb[0].mxu0  ;;  %v2938_v40 = vadd.f32 %v2937_v32, %v2625_v4  ;;  %v1488_v41 = vpop.f32.mrb[9].mxu1 }
 0x1cc   : > { %v2933_v43 = vadd.f32 %v2619_v39, %v2399_v17  ;;  %v1468_v44 = vpop.f32.mrb[1].mxu0  ;;  %v2940_v46 = vadd.f32 %v2939_v26, %v1488_v41 }
 0x1cd   : > { %v1528_v47 = vadd.f32 %v2938_v40, %v1520_v38  ;;  %v2934_v48 = vadd.f32 %v1468_v44, %v767_v21 }
 0x1ce   : > { %v1524_v49 = vadd.f32 %v2933_v43, %v1516_v13  ;;  %v1527_v50 = vadd.f32 %v2940_v46, %v1519_v42  ;;  %v2628_v51 = vpop.f32.mrb[10].mxu1 }
 0x1cf   : > { %1536 = vst [vmem:[#allocation2 + $0x28] sm:$0xff] %v1528_v47  ;;  %v1523_v53 = vadd.f32 %v2934_v48, %v1515_v45  ;;  %v2622_v56 = vpop.f32.mrb[2].mxu0  ;;  %v2942_v54 = vadd.f32 %v2941_v30, %v2628_v51  ;;  %v1498_v61 = vpop.f32.mrb[11].mxu1  ;;  %1542 = sbr.rel (%p2007_p12) target bundleno = 504 (0x1f8), region = 40 }
 0x1d0   : > { %1532 = vst [vmem:[#allocation2 + $0x8] sm:$0xff] %v1524_v49  ;;  %1535 = vst [vmem:[#allocation2 + $0x20] sm:$0xff] %v1527_v50  ;;  %v2935_v59 = vadd.f32 %v2622_v56, %v2402_v23  ;;  %v1478_v60 = vpop.f32.mrb[3].mxu0  ;;  %v2944_v3 = vadd.f32 %v2943_v37, %v1498_v61 }
 0x1d1   : > { %1531 = vst [vmem:[#allocation2] sm:$0xff] %v1523_v53  ;;  %v1530_v6 = vadd.f32 %v2942_v54, %v1522_v52  ;;  %v2936_v8 = vadd.f32 %v1478_v60, %v777_v24 }
 0x1d2   : > { %v1526_v9 = vadd.f32 %v2935_v59, %v1518_v57  ;;  %v1529_v2 = vadd.f32 %v2944_v3, %v1521_v58 }
 0x1d3   : > { %1538 = vst [vmem:[#allocation2 + $0x38] sm:$0xff] %v1530_v6  ;;  %v1525_v10 = vadd.f32 %v2936_v8, %v1517_v62 }
 0x1d4   : > { %1534 = vst [vmem:[#allocation2 + $0x18] sm:$0xff] %v1526_v9  ;;  %1537 = vst [vmem:[#allocation2 + $0x30] sm:$0xff] %v1529_v2 }
 0x1d5   : > { %1533 = vst [vmem:[#allocation2 + $0x10] sm:$0xff] %v1525_v10 }
 0x1d6   : > { %v1548_v15 = vld [vmem:[#allocation2 + $0x28] sm:$0xff] }
 0x1d7   : > { %v1544_v5 = vld [vmem:[#allocation2 + $0x8] sm:$0xff]  ;;  %v1547_v20 = vld [vmem:[#allocation2 + $0x20] sm:$0xff]  ;;  %1556 = vst [vmem:[%s3448_s7 + $0x28] sm:$0xff] %v1548_v15  ;;  %v1578_v29 = vmul.f32 %v1548_v15, %v1548_v15 }
 0x1d8   : > { %v1543_v16 = vld [vmem:[#allocation2] sm:$0xff]  ;;  %1552 = vst [vmem:[%s3448_s7 + $0x8] sm:$0xff] %v1544_v5  ;;  %v1574_v1 = vmul.f32 %v1544_v5, %v1544_v5  ;;  %1555 = vst [vmem:[%s3448_s7 + $0x20] sm:$0xff] %v1547_v20  ;;  %v1577_v21 = vmul.f32 %v1547_v20, %v1547_v20 }
 0x1d9   : > { %1551 = vst [vmem:[%s3448_s7] sm:$0xff] %v1543_v16  ;;  %v1573_v63 = vmul.f32 %v1543_v16, %v1543_v16  ;;  %v1559_v12 = vadd.f32 %v1544_v5, %v1543_v16 }
 0x1da   : > { %v1550_v22 = vld [vmem:[#allocation2 + $0x38] sm:$0xff] }
 0x1db   : > { %v1546_v11 = vld [vmem:[#allocation2 + $0x18] sm:$0xff]  ;;  %v1549_v25 = vld [vmem:[#allocation2 + $0x30] sm:$0xff]  ;;  %v1581_v27 = vadd.f32 %v1574_v1, %v1573_v63  ;;  %1558 = vst [vmem:[%s3448_s7 + $0x38] sm:$0xff] %v1550_v22  ;;  %v1580_v34 = vmul.f32 %v1550_v22, %v1550_v22 }
 0x1dc   : > { %v1545_v7 = vld [vmem:[#allocation2 + $0x10] sm:$0xff]  ;;  %1554 = vst [vmem:[%s3448_s7 + $0x18] sm:$0xff] %v1546_v11  ;;  %v1576_v19 = vmul.f32 %v1546_v11, %v1546_v11  ;;  %1557 = vst [vmem:[%s3448_s7 + $0x30] sm:$0xff] %v1549_v25  ;;  %v1579_v32 = vmul.f32 %v1549_v25, %v1549_v25 }
 0x1dd   : > { %1553 = vst [vmem:[%s3448_s7 + $0x10] sm:$0xff] %v1545_v7  ;;  %v1575_v14 = vmul.f32 %v1545_v7, %v1545_v7  ;;  %v1560_v18 = vadd.f32 %v1559_v12, %v1545_v7 }
 0x1df   : > { %v1582_v55 = vadd.f32 %v1581_v27, %v1575_v14  ;;  %v1561_v17 = vadd.f32 %v1560_v18, %v1546_v11 }
 0x1e1   : > { %v1583_v23 = vadd.f32 %v1582_v55, %v1576_v19  ;;  %v1562_v24 = vadd.f32 %v1561_v17, %v1547_v20 }
 0x1e3   : > { %v1584_v28 = vadd.f32 %v1583_v23, %v1577_v21  ;;  %v1563_v31 = vadd.f32 %v1562_v24, %v1548_v15 }
 0x1e5   : > { %v1585_v33 = vadd.f32 %v1584_v28, %v1578_v29  ;;  %v1564_v26 = vadd.f32 %v1563_v31, %v1549_v25 }
 0x1e7   : > { %v1586_v0 = vadd.f32 %v1585_v33, %v1579_v32  ;;  %v1565_v35 = vadd.f32 %v1564_v26, %v1550_v22 }
 0x1e9   : > { %v1566_v30 = vrot.slane %v1565_v35, 4  ;;  %v1587_v36 = vadd.f32 %v1586_v0, %v1580_v34 }
 0x1eb   : > { %v1567_v37 = vadd.f32 %v1566_v30, %v1565_v35  ;;  %v1588_v4 = vrot.slane %v1587_v36, 4 }
 0x1ed   : > { %v1568_v38 = vrot.slane %v1567_v37, 2  ;;  %v1589_v39 = vadd.f32 %v1588_v4, %v1587_v36 }
 0x1ef   : > { %v1569_v13 = vadd.f32 %v1568_v38, %v1567_v37  ;;  %v1590_v40 = vrot.slane %v1589_v39, 2 }
 0x1f1   : > { %v1570_v41 = vrot.slane %v1569_v13, 1  ;;  %v1591_v42 = vadd.f32 %v1590_v40, %v1589_v39 }
 0x1f3   : > { %v1571_v43 = vadd.f32 %v1570_v41, %v1569_v13  ;;  %v1592_v44 = vrot.slane %v1591_v42, 1 }
 0x1f5   : > { %1572 = vst [vmem:[%s3450_s9] sm:$0x1] %v1571_v43  ;;  %v1593_v45 = vadd.f32 %v1592_v44, %v1591_v42 }
 0x1f7   : > { %1594 = vst [vmem:[%s3450_s9 + $0x1] sm:$0x1] %v1593_v45 }
 0x1f8 PF: > { %s2010_s15 = sshll.u32 %s3261_s16, 3  ;;  %s2011_s22 = sshll.u32 %s3265_s17, 5 }
 0x1f9   : > { %s1617_s5 = sshll.u32 %s3448_s7, 4  ;;  %s1614_s23 = sadd.s32 %s2011_s22, %s2010_s15  ;;  %s3758_s5 = int_to_ptr.vmem [resolvable:$true] %s1617_s5 }
 0x1fa   : > { %s2012_s29 = sshll.u32 %s1614_s23, 7  ;;  %s1596_s24 = scalar_lea.sflag [#allocation5], %s3435_s25 }
 0x1fb   : > { %s3763_s27 = scalar_lea.hbm %s3850_s2, %s2012_s29  ;;  %s3135_s26 = scalar_lea.vmem %s3758_s5, 1024 }
 0x1fc   : > { %p3136_p1 = scmp.ne.s32.totalorder %s3758_s5, %s3135_s26  ;;  %p3870_p3 = scmp.ne.s32.totalorder %s3860_s28, 0 }
 0x1fd   : > { %s3287_s10 = smov [#allocation6]  }
 0x1fe   : > { %p3137_p5 = pnand %p3136_p1, %p3870_p3  ;;  %s3139_s7 = sshll.u32 %s3287_s10, 4  ;;  %s3140_s7 = int_to_ptr.vmem [resolvable:$false] %s3139_s7 }
 0x1ff   : > { %s3141_s8 = scalar_lea.vmem %s3140_s7, 2048  ;;  %p3142_p9 = scmp.lt.s32.totalorder %s3758_s5, %s3140_s7 }
 0x200   : > { %p3138_p7 = pneg %p3137_p5  ;;  %p3143_p10 = scmp.lt.s32.totalorder %s3141_s8, %s3135_s26 }
 0x202   : > { %p3144_p13 = por %p3143_p10, %p3142_p9 }
 0x204   : > { %p3145_p0 = pnand %p3144_p13, %p3138_p7 }
 0x206   : > { %3148 = shalt.err (!%p3145_p0)
}
 0x207   : > { %s3149_s15 = scalar_lea.hbm %s3763_s27, 1024  ;;  %s3153_s29 = scalar_lea.hbm %s3850_s2, 8192 }
 0x208   : > { %p3150_p2 = scmp.ne.s32.totalorder %s3763_s27, %s3149_s15  ;;  %p3154_p8 = scmp.lt.u32.totalorder %s3763_s27, %s3850_s2 }
 0x209   : > { %p3155_p11 = scmp.lt.u32.totalorder %s3153_s29, %s3149_s15  ;;  %p3157_p1 = scmp.lt.u32.totalorder %s3149_s15, %s3763_s27 }
 0x20a   : > { %p3151_p4 = pnand %p3150_p2, %p3870_p3 }
 0x20b   : > { %p3156_p12 = por %p3155_p11, %p3154_p8 }
 0x20c   : > { %p3152_p6 = pneg %p3151_p4 }
 0x20d   : > { %p3158_p5 = por %p3157_p1, %p3156_p12 }
 0x20f   : > { %p3159_p7 = pnand %p3158_p5, %p3152_p6 }
 0x211   : > { %3162 = shalt.err (!%p3159_p7)
}
 0x212   : > { %s3288_s26 = smov 128   ;;  %s3289_s10 = smov 8  }
 0x213   : > { %3003 = dma.vmem_to_hbm [thread:$0]  (%p3870_p3), %s3758_s5, 1024, %s3763_s27, %s1596_s24, %s3288_s26, %s3288_s26, %s3289_s10  }
 0x214   : > { %s2013_s7 = sshll.u32 %s3265_s17, 2  ;;  %s1636_s15 = sshll.u32 %s3450_s9, 4  ;;  %s3792_s15 = int_to_ptr.vmem [resolvable:$true] %s1636_s15 }
 0x215   : > { %s1632_s8 = sadd.s32 %s3261_s16, %s2013_s7  ;;  %s1601_s6 = scalar_lea.sflag [#allocation8], %s3435_s25 }
 0x216   : > { %s2014_s22 = sshll.u32 %s1632_s8, 5  ;;  %s3163_s0 = scalar_lea.vmem %s3792_s15, 32 }
 0x217   : > { %s1634_s4 = scalar_lea.hbm %s3851_s3, %s2014_s22  ;;  %p3164_p9 = scmp.ne.s32.totalorder %s3792_s15, %s3163_s0 }
 0x218   : > { %s3290_s5 = smov [#allocation7]  }
 0x219   : > { %p3165_p10 = pnand %p3164_p9, %p3870_p3  ;;  %s3167_s17 = sshll.u32 %s3290_s5, 4  ;;  %s3168_s17 = int_to_ptr.vmem [resolvable:$false] %s3167_s17 }
 0x21a   : > { %s3169_s16 = scalar_lea.vmem %s3168_s17, 64  ;;  %p3170_p0 = scmp.lt.s32.totalorder %s3792_s15, %s3168_s17 }
 0x21b   : > { %p3166_p13 = pneg %p3165_p10  ;;  %p3171_p2 = scmp.lt.s32.totalorder %s3169_s16, %s3163_s0 }
 0x21d   : > { %p3172_p4 = por %p3171_p2, %p3170_p0 }
 0x21f   : > { %p3173_p6 = pnand %p3172_p4, %p3166_p13 }
 0x221   : > { %3176 = shalt.err (!%p3173_p6)
}
 0x222   : > { %s3177_s9 = scalar_lea.hbm %s1634_s4, 32  ;;  %s3181_s24 = scalar_lea.hbm %s3851_s3, 256 }
 0x223   : > { %p3178_p8 = scmp.ne.s32.totalorder %s1634_s4, %s3177_s9  ;;  %p3182_p1 = scmp.lt.u32.totalorder %s1634_s4, %s3851_s3 }
 0x224   : > { %p3183_p5 = scmp.lt.u32.totalorder %s3181_s24, %s3177_s9  ;;  %p3185_p9 = scmp.lt.u32.totalorder %s3177_s9, %s1634_s4 }
 0x225   : > { %p3179_p11 = pnand %p3178_p8, %p3870_p3 }
 0x226   : > { %p3184_p7 = por %p3183_p5, %p3182_p1 }
 0x227   : > { %p3180_p12 = pneg %p3179_p11 }
 0x228   : > { %p3186_p10 = por %p3185_p9, %p3184_p7 }
 0x22a   : > { %p3187_p13 = pnand %p3186_p10, %p3180_p12 }
 0x22c   : > { %3190 = shalt.err (!%p3187_p13)
}
 0x22d   : > { %3004 = dma.vmem_to_hbm [thread:$0]  (%p3870_p3), %s3792_s15, 32, %s1634_s4, %s1601_s6  }
 0x22e PF: > { %p3020_p0 = scmp.ge.s32.totalorder %s3281_s21, 2  ;;  %s1648_s0 = sand.u32 1, %s3245_s12  }
 0x22f   : > { %p3871_p2 = scmp.ne.s32.totalorder %s3862_s30, 0  ;;  %s1649_s7 = scalar_lea.sflag [#allocation5], %s1648_s0 }
 0x231   : > { %p3012_p4 = pnand %p3020_p0, %p3871_p2 }
 0x233   : > { %3236 = dma.done.wait (!%p3012_p4), %s1649_s7, 1024  }
 0x234   : > { %3238 = vsyncadd (!%p3012_p4), %s1649_s7, 4294966272  ;;  %s1658_s8 = scalar_lea.sflag [#allocation8], %s1648_s0 }
 0x235   : > { %3240 = dma.done.wait (!%p3012_p4), %s1658_s8, 32  }
 0x236   : > { %3242 = vsyncadd (!%p3012_p4), %s1658_s8, 4294967264  ;;  %s21_s21 = sadd.s32 1, %s3281_s21   ;;  %s3872_s28 = sld [smem:[#allocation12_spill]] }
 0x237   : > { %p18_p6 = scmp.ge.s32.totalorder %s21_s21, 26   ;;  %s3873_s22 = sld [smem:[#allocation13_spill]] }
 0x238   : > { %s3874_s23 = sld [smem:[#allocation14_spill]]  ;;  %s3875_s12 = smov %s3249_s13 }
 0x239   : > { %s3876_s13 = smov %s3253_s14  ;;  %s3877_s14 = smov %s3410_s11 }
 0x23a   : > { %s3878_s15 = smov %s3269_s18  ;;  %s3879_s16 = smov %s3273_s19 }
 0x23b   : > { %s3880_s17 = smov %s3277_s20  ;;  %20 = sbr.rel (!%p18_p6) target bundleno = 11 (0xb), region = 105 }
 0x23c   : > { %s3881_s18 = smov %s3872_s28 }
 0x23d   : > { %s3882_s19 = smov %s3873_s22 }
 0x23e   : > { %s3883_s20 = smov %s3874_s23 }
 0x242   :  { %1663 = vsyncpa [#allocation4], 1 }
 0x243   :  { %1665 = vsyncpa [#allocation4 + $0x1], 1 }
 0x244   :  { %1666 = vsyncpa [#allocation5], 1 }
 0x245   :  { %1668 = vsyncpa [#allocation5 + $0x1], 1 }
 0x246   :  { %1669 = vsyncpa [#allocation8], 1 }
 0x247   :  { %1671 = vsyncpa [#allocation8 + $0x1], 1 }

</bundles_post_ra>
